<compile_context>
chip_gen: v7x
topology: tpu7x:2x2x1
jax: 0.10.0
libtpu: 0.0.40
codegen_flags: <defaults>
</compile_context>

<pallas_src>
import functools

import jax
import jax.numpy as jnp
import numpy as np
from jax.experimental import pallas as pl
from jax.experimental.pallas import tpu as pltpu


# ---------------------------------------------------------------------------
# Fused Bottleneck kernel (one grid step per image).
# ---------------------------------------------------------------------------
def _bottleneck_kernel(x_ref, w1_ref, b1_ref, w2_ref, b2_ref, w3_ref, b3_ref,
                       *rest, H, W, Ho, Wo, stride, has_sc):
    if has_sc:
        wsc_ref, bsc_ref, o_ref, xpad_ref, col_ref = rest
    else:
        o_ref, xpad_ref, col_ref = rest

    Cin = x_ref.shape[-1]
    planes = w1_ref.shape[-1]

    # ---- conv1 (1x1) + folded-BN bias + ReLU ------------------------------
    x2d = x_ref[0].reshape(H * W, Cin)                 # f32 (identity residual)
    x2d_bf = x2d.astype(jnp.bfloat16)                  # single cast for the MXU
    out1 = jnp.maximum(
        jnp.dot(x2d_bf, w1_ref[...], preferred_element_type=jnp.float32)
        + b1_ref[...], 0.0)

    # Zero-bordered padded activation; lives only in VMEM (no HBM pad pass).
    xpad_ref[...] = jnp.zeros_like(xpad_ref)
    xpad_ref[1:H + 1, 1:W + 1, :] = out1.reshape(H, W, planes)

    # ---- conv2 (3x3, pad=1, stride) via in-VMEM im2col + one MXU matmul ---
    for dh in range(3):
        for dw in range(3):
            idx = dh * 3 + dw
            if stride == 1:
                tap = xpad_ref[dh:dh + Ho, dw:dw + Wo, :]
            else:
                # TODO(synk): strided sublane slice path is untested here.
                tap = xpad_ref[pl.ds(dh, Ho, stride), pl.ds(dw, Wo, stride), :]
            col_ref[:, idx * planes:(idx + 1) * planes] = (
                tap.reshape(Ho * Wo, planes).astype(jnp.bfloat16))

    out2 = jnp.maximum(
        jnp.dot(col_ref[...], w2_ref[...], preferred_element_type=jnp.float32)
        + b2_ref[...], 0.0)

    # ---- conv3 (1x1) + folded-BN bias (no ReLU yet) ------------------------
    main = jnp.dot(out2.astype(jnp.bfloat16), w3_ref[...],
                   preferred_element_type=jnp.float32) + b3_ref[...]

    # ---- shortcut + residual add + final ReLU ------------------------------
    if has_sc:
        if stride == 1:
            xsc = x2d_bf
        else:
            # TODO(synk): strided shortcut subsample untested (stride=1 only).
            xsc = x_ref[0, pl.ds(0, Ho, stride), pl.ds(0, Wo, stride), :]
            xsc = xsc.reshape(Ho * Wo, Cin).astype(jnp.bfloat16)
        sc = (jnp.dot(xsc, wsc_ref[...], preferred_element_type=jnp.float32)
              + bsc_ref[...])
    else:
        # Identity path (only possible when stride == 1): keep f32 residual.
        sc = x2d

    res = jnp.maximum(main + sc, 0.0)
    o_ref[0] = res.reshape(Ho, Wo, -1).astype(o_ref.dtype)


# ---------------------------------------------------------------------------
# Bottleneck forward (NCHW in/out, like the PyTorch module).
# ---------------------------------------------------------------------------
def bottleneck_forward(x_nchw, params, stride=1):
    N, Cin, H, W = x_nchw.shape
    planes = params["w1"].shape[-1]
    out_planes = params["w3"].shape[-1]            # expansion * planes
    Ho = (H + 2 - 3) // stride + 1
    Wo = (W + 2 - 3) // stride + 1
    has_sc = (stride != 1) or (Cin != out_planes)

    # Module boundary: NCHW -> NHWC, kept f32 (no extra host-side cast pass).
    x = jnp.transpose(x_nchw, (0, 2, 3, 1))

    # Fold eval-mode BN scale into the conv weights; only bias stays in-kernel.
    w1 = (params["w1"].reshape(Cin, planes)
          * params["scale1"]).astype(jnp.bfloat16)
    b1 = params["bias1"].reshape(1, planes).astype(jnp.float32)
    # (3,3,planes,planes) -> (9*planes, planes): row index = (dh*3+dw)*planes+cin,
    # matching the im2col column order used in the kernel.
    w2 = (params["w2"] * params["scale2"]).reshape(
        9 * planes, planes).astype(jnp.bfloat16)
    b2 = params["bias2"].reshape(1, planes).astype(jnp.float32)
    w3 = (params["w3"].reshape(planes, out_planes)
          * params["scale3"]).astype(jnp.bfloat16)
    b3 = params["bias3"].reshape(1, out_planes).astype(jnp.float32)

    args = [x, w1, b1, w2, b2, w3, b3]
    in_specs = [
        pl.BlockSpec((1, H, W, Cin), lambda n: (n, 0, 0, 0)),       # x tile
        pl.BlockSpec((Cin, planes), lambda n: (0, 0)),              # w1
        pl.BlockSpec((1, planes), lambda n: (0, 0)),                # b1
        pl.BlockSpec((9 * planes, planes), lambda n: (0, 0)),       # w2 (im2col K)
        pl.BlockSpec((1, planes), lambda n: (0, 0)),                # b2
        pl.BlockSpec((planes, out_planes), lambda n: (0, 0)),       # w3
        pl.BlockSpec((1, out_planes), lambda n: (0, 0)),            # b3
    ]
    if has_sc:
        wsc = (params["w_sc"].reshape(Cin, out_planes)
               * params["scale_sc"]).astype(jnp.bfloat16)
        bsc = params["bias_sc"].reshape(1, out_planes).astype(jnp.float32)
        args += [wsc, bsc]
        in_specs += [
            pl.BlockSpec((Cin, out_planes), lambda n: (0, 0)),      # w_sc
            pl.BlockSpec((1, out_planes), lambda n: (0, 0)),        # b_sc
        ]

    kernel = functools.partial(_bottleneck_kernel, H=H, W=W, Ho=Ho, Wo=Wo,
                               stride=stride, has_sc=has_sc)

    # Advisory cost estimate (helps XLA schedule the surrounding transposes).
    flops = 2 * N * (H * W * Cin * planes
                     + Ho * Wo * 9 * planes * planes
                     + Ho * Wo * planes * out_planes
                     + (Ho * Wo * Cin * out_planes if has_sc else 0))
    w_bytes = 2 * (Cin * planes + 9 * planes * planes + planes * out_planes)
    b_bytes = 4 * (2 * planes + out_planes)
    if has_sc:
        w_bytes += 2 * Cin * out_planes
        b_bytes += 4 * out_planes
    bytes_accessed = (4 * N * H * W * Cin + w_bytes + b_bytes
                      + 4 * N * Ho * Wo * out_planes)

    out = pl.pallas_call(
        kernel,
        out_shape=jax.ShapeDtypeStruct((N, Ho, Wo, out_planes), jnp.float32),
        grid=(N,),
        in_specs=in_specs,
        out_specs=pl.BlockSpec((1, Ho, Wo, out_planes), lambda n: (n, 0, 0, 0)),
        scratch_shapes=[
            # zero-bordered conv1 output (VMEM-only, never hits HBM)
            pltpu.VMEM((H + 2, W + 2, planes), jnp.float32),
            # in-VMEM im2col staging for the 3x3 conv
            pltpu.VMEM((Ho * Wo, 9 * planes), jnp.bfloat16),
        ],
        compiler_params=pltpu.CompilerParams(
            dimension_semantics=("parallel",),
            vmem_limit_bytes=32 * 1024 * 1024),
        cost_estimate=pl.CostEstimate(flops=flops, transcendentals=0,
                                      bytes_accessed=bytes_accessed),
    )(*args)

    return jnp.transpose(out, (0, 3, 1, 2))        # NHWC -> NCHW


# ---------------------------------------------------------------------------
# Deterministic parameter init (BN folded: running mean=0, var=1, eps=1e-5).
# ---------------------------------------------------------------------------
def init_params(key, in_planes, planes, stride=1, expansion=4):
    eps = 1e-5
    out_planes = expansion * planes
    ks = jax.random.split(key, 12)

    def bn_params(kg, kb, c):
        gamma = 1.0 + 0.1 * jax.random.normal(kg, (c,), jnp.float32)
        beta = 0.1 * jax.random.normal(kb, (c,), jnp.float32)
        scale = gamma / jnp.sqrt(1.0 + eps)        # running mean=0, var=1
        return scale, beta

    w1 = 0.1 * jax.random.normal(ks[0], (1, 1, in_planes, planes), jnp.float32)
    w2 = 0.1 * jax.random.normal(ks[1], (3, 3, planes, planes), jnp.float32)
    w3 = 0.1 * jax.random.normal(ks[2], (1, 1, planes, out_planes), jnp.float32)
    s1, b1 = bn_params(ks[3], ks[4], planes)
    s2, b2 = bn_params(ks[5], ks[6], planes)
    s3, b3 = bn_params(ks[7], ks[8], out_planes)

    params = dict(w1=w1, w2=w2, w3=w3, scale1=s1, bias1=b1,
                  scale2=s2, bias2=b2, scale3=s3, bias3=b3)

    if stride != 1 or in_planes != out_planes:
        w_sc = 0.1 * jax.random.normal(ks[9], (1, 1, in_planes, out_planes),
                                       jnp.float32)
        ssc, bsc = bn_params(ks[10], ks[11], out_planes)
        params.update(w_sc=w_sc, scale_sc=ssc, bias_sc=bsc)
    return params


# ---------------------------------------------------------------------------
# Pure-JAX reference (for correctness check).
# ---------------------------------------------------------------------------
def ref_forward(x_nchw, params, stride=1):
    dn = ("NHWC", "HWIO", "NHWC")
    hp = jax.lax.Precision.HIGHEST
    x = jnp.transpose(x_nchw, (0, 2, 3, 1))
    Cin = x.shape[-1]
    out_planes = params["w3"].shape[-1]

    def conv(v, w, s, pad):
        return jax.lax.conv_general_dilated(
            v, w, (s, s), [(pad, pad), (pad, pad)],
            dimension_numbers=dn, precision=hp)

    out = jnp.maximum(conv(x, params["w1"], 1, 0) * params["scale1"]
                      + params["bias1"], 0.0)
    out = jnp.maximum(conv(out, params["w2"], stride, 1) * params["scale2"]
                      + params["bias2"], 0.0)
    out = conv(out, params["w3"], 1, 0) * params["scale3"] + params["bias3"]
    if stride != 1 or Cin != out_planes:
        sc = (conv(x, params["w_sc"], stride, 0) * params["scale_sc"]
              + params["bias_sc"])
    else:
        sc = x
    out = jnp.maximum(out + sc, 0.0)
    return jnp.transpose(out, (0, 3, 1, 2))


if __name__ == "__main__":
    key = jax.random.PRNGKey(0)
    k1, k2, k3, k4 = jax.random.split(key, 4)

    # Case 1: projection shortcut (in_planes != expansion*planes), stride=1.
    N, Cin, H, W, planes, stride = 2, 4, 16, 16, 8, 1
    x = jax.random.normal(k1, (N, Cin, H, W), jnp.float32)
    params = init_params(k2, Cin, planes, stride=stride)
    out = jax.block_until_ready(bottleneck_forward(x, params, stride=stride))
    ref = ref_forward(x, params, stride=stride)
    np.testing.assert_allclose(np.asarray(out), np.asarray(ref),
                               rtol=3e-2, atol=3e-2)

    # Case 2: identity shortcut (in_planes == expansion*planes, stride=1).
    Cin2 = 4 * planes
    x2 = jax.random.normal(k3, (N, Cin2, H, W), jnp.float32)
    params2 = init_params(k4, Cin2, planes, stride=1)
    out2 = jax.block_until_ready(bottleneck_forward(x2, params2, stride=1))
    ref2 = ref_forward(x2, params2, stride=1)
    np.testing.assert_allclose(np.asarray(out2), np.asarray(ref2),
                               rtol=3e-2, atol=3e-2)

    print("KERNEL_OK")
</pallas_src>

<mosaic_0001>
module attributes {stable_mosaic.version = 11 : i64} {
  func.func @_bottleneck_kernel(%arg0: i32, %arg1: memref<1x16x16x4xf32, #tpu.memory_space<vmem>>, %arg2: memref<4x8xbf16, #tpu.memory_space<vmem>>, %arg3: memref<1x8xf32, #tpu.memory_space<vmem>>, %arg4: memref<72x8xbf16, #tpu.memory_space<vmem>>, %arg5: memref<1x8xf32, #tpu.memory_space<vmem>>, %arg6: memref<8x32xbf16, #tpu.memory_space<vmem>>, %arg7: memref<1x32xf32, #tpu.memory_space<vmem>>, %arg8: memref<4x32xbf16, #tpu.memory_space<vmem>>, %arg9: memref<1x32xf32, #tpu.memory_space<vmem>>, %arg10: memref<1x16x16x32xf32, #tpu.memory_space<vmem>>, %arg11: memref<18x18x8xf32, #tpu.memory_space<vmem>>, %arg12: memref<256x72xbf16, #tpu.memory_space<vmem>>) attributes {dimension_semantics = [#tpu.dimension_semantics<parallel>], iteration_bounds = array<i64: 2>, scalar_prefetch = 0 : i64, scratch_operands = 2 : i64, tpu.core_type = #tpu.core_type<tc>, window_params = [{transform_indices = @transform_0, window_bounds = array<i64: 1, 16, 16, 4>}, {pipeline_mode = #tpu.pipeline_mode<synchronous>, transform_indices = @transform_1, window_bounds = array<i64: 4, 8>}, {pipeline_mode = #tpu.pipeline_mode<synchronous>, transform_indices = @transform_2, window_bounds = array<i64: 1, 8>}, {pipeline_mode = #tpu.pipeline_mode<synchronous>, transform_indices = @transform_3, window_bounds = array<i64: 72, 8>}, {pipeline_mode = #tpu.pipeline_mode<synchronous>, transform_indices = @transform_4, window_bounds = array<i64: 1, 8>}, {pipeline_mode = #tpu.pipeline_mode<synchronous>, transform_indices = @transform_5, window_bounds = array<i64: 8, 32>}, {pipeline_mode = #tpu.pipeline_mode<synchronous>, transform_indices = @transform_6, window_bounds = array<i64: 1, 32>}, {pipeline_mode = #tpu.pipeline_mode<synchronous>, transform_indices = @transform_7, window_bounds = array<i64: 4, 32>}, {pipeline_mode = #tpu.pipeline_mode<synchronous>, transform_indices = @transform_8, window_bounds = array<i64: 1, 32>}, {transform_indices = @transform_9, window_bounds = array<i64: 1, 16, 16, 32>}]} {
    %c0 = arith.constant 0 : index
    %c0_0 = arith.constant 0 : index
    %c0_1 = arith.constant 0 : index
    %c0_2 = arith.constant 0 : index
    %0 = vector.load %arg1[%c0, %c0_0, %c0_1, %c0_2] : memref<1x16x16x4xf32, #tpu.memory_space<vmem>>, vector<1x16x16x4xf32>
    %1 = vector.shape_cast %0 : vector<1x16x16x4xf32> to vector<16x16x4xf32>
    %2 = vector.shape_cast %1 : vector<16x16x4xf32> to vector<256x4xf32>
    %3 = arith.truncf %2 : vector<256x4xf32> to vector<256x4xbf16>
    %c0_3 = arith.constant 0 : index
    %c0_4 = arith.constant 0 : index
    %4 = vector.load %arg2[%c0_3, %c0_4] : memref<4x8xbf16, #tpu.memory_space<vmem>>, vector<4x8xbf16>
    %cst = arith.constant dense<0.000000e+00> : vector<256x8xf32>
    %5 = tpu.matmul %3, %4, %cst {dimension_numbers = #tpu.dot_dimension_numbers<[1], [0], [0], [1], [0, 0, 1, 1], [], []>} : vector<256x4xbf16>, vector<4x8xbf16>, vector<256x8xf32> -> vector<256x8xf32>
    %c0_5 = arith.constant 0 : index
    %c0_6 = arith.constant 0 : index
    %6 = vector.load %arg3[%c0_5, %c0_6] : memref<1x8xf32, #tpu.memory_space<vmem>>, vector<1x8xf32>
    %7 = vector.broadcast %6 : vector<1x8xf32> to vector<256x8xf32>
    %8 = arith.addf %5, %7 : vector<256x8xf32>
    %cst_7 = arith.constant 0.000000e+00 : f32
    %9 = vector.broadcast %cst_7 : f32 to vector<256x8xf32>
    %10 = arith.maximumf %8, %9 : vector<256x8xf32>
    %cst_8 = arith.constant 0.000000e+00 : f32
    %11 = vector.broadcast %cst_8 : f32 to vector<18x18x8xf32>
    %c0_9 = arith.constant 0 : index
    %c0_10 = arith.constant 0 : index
    %c0_11 = arith.constant 0 : index
    %12 = vector.load %arg11[%c0_9, %c0_10, %c0_11] : memref<18x18x8xf32, #tpu.memory_space<vmem>>, vector<18x18x8xf32>
    tpu.vector_store %arg11[%c0_9, %c0_10, %c0_11], %11 {strides = array<i32>} : memref<18x18x8xf32, #tpu.memory_space<vmem>>, vector<18x18x8xf32>,
    %13 = vector.shape_cast %10 : vector<256x8xf32> to vector<16x16x8xf32>
    %c1 = arith.constant 1 : index
    %c1_12 = arith.constant 1 : index
    %c0_13 = arith.constant 0 : index
    %14 = vector.load %arg11[%c1, %c1_12, %c0_13] : memref<18x18x8xf32, #tpu.memory_space<vmem>>, vector<16x16x8xf32>
    tpu.vector_store %arg11[%c1, %c1_12, %c0_13], %13 {strides = array<i32>} : memref<18x18x8xf32, #tpu.memory_space<vmem>>, vector<16x16x8xf32>,
    %c0_14 = arith.constant 0 : index
    %c0_15 = arith.constant 0 : index
    %c0_16 = arith.constant 0 : index
    %15 = vector.load %arg11[%c0_14, %c0_15, %c0_16] : memref<18x18x8xf32, #tpu.memory_space<vmem>>, vector<16x16x8xf32>
    %16 = vector.shape_cast %15 : vector<16x16x8xf32> to vector<256x8xf32>
    %17 = arith.truncf %16 : vector<256x8xf32> to vector<256x8xbf16>
    %c0_17 = arith.constant 0 : index
    %c0_18 = arith.constant 0 : index
    %18 = vector.load %arg12[%c0_17, %c0_18] : memref<256x72xbf16, #tpu.memory_space<vmem>>, vector<256x8xbf16>
    tpu.vector_store %arg12[%c0_17, %c0_18], %17 {strides = array<i32>} : memref<256x72xbf16, #tpu.memory_space<vmem>>, vector<256x8xbf16>,
    %c0_19 = arith.constant 0 : index
    %c1_20 = arith.constant 1 : index
    %c0_21 = arith.constant 0 : index
    %19 = vector.load %arg11[%c0_19, %c1_20, %c0_21] : memref<18x18x8xf32, #tpu.memory_space<vmem>>, vector<16x16x8xf32>
    %20 = vector.shape_cast %19 : vector<16x16x8xf32> to vector<256x8xf32>
    %21 = arith.truncf %20 : vector<256x8xf32> to vector<256x8xbf16>
    %c0_22 = arith.constant 0 : index
    %c8 = arith.constant 8 : index
    %22 = vector.load %arg12[%c0_22, %c8] : memref<256x72xbf16, #tpu.memory_space<vmem>>, vector<256x8xbf16>
    tpu.vector_store %arg12[%c0_22, %c8], %21 {strides = array<i32>} : memref<256x72xbf16, #tpu.memory_space<vmem>>, vector<256x8xbf16>,
    %c0_23 = arith.constant 0 : index
    %c2 = arith.constant 2 : index
    %c0_24 = arith.constant 0 : index
    %23 = vector.load %arg11[%c0_23, %c2, %c0_24] : memref<18x18x8xf32, #tpu.memory_space<vmem>>, vector<16x16x8xf32>
    %24 = vector.shape_cast %23 : vector<16x16x8xf32> to vector<256x8xf32>
    %25 = arith.truncf %24 : vector<256x8xf32> to vector<256x8xbf16>
    %c0_25 = arith.constant 0 : index
    %c16 = arith.constant 16 : index
    %26 = vector.load %arg12[%c0_25, %c16] : memref<256x72xbf16, #tpu.memory_space<vmem>>, vector<256x8xbf16>
    tpu.vector_store %arg12[%c0_25, %c16], %25 {strides = array<i32>} : memref<256x72xbf16, #tpu.memory_space<vmem>>, vector<256x8xbf16>,
    %c1_26 = arith.constant 1 : index
    %c0_27 = arith.constant 0 : index
    %c0_28 = arith.constant 0 : index
    %27 = vector.load %arg11[%c1_26, %c0_27, %c0_28] : memref<18x18x8xf32, #tpu.memory_space<vmem>>, vector<16x16x8xf32>
    %28 = vector.shape_cast %27 : vector<16x16x8xf32> to vector<256x8xf32>
    %29 = arith.truncf %28 : vector<256x8xf32> to vector<256x8xbf16>
    %c0_29 = arith.constant 0 : index
    %c24 = arith.constant 24 : index
    %30 = vector.load %arg12[%c0_29, %c24] : memref<256x72xbf16, #tpu.memory_space<vmem>>, vector<256x8xbf16>
    tpu.vector_store %arg12[%c0_29, %c24], %29 {strides = array<i32>} : memref<256x72xbf16, #tpu.memory_space<vmem>>, vector<256x8xbf16>,
    %c1_30 = arith.constant 1 : index
    %c1_31 = arith.constant 1 : index
    %c0_32 = arith.constant 0 : index
    %31 = vector.load %arg11[%c1_30, %c1_31, %c0_32] : memref<18x18x8xf32, #tpu.memory_space<vmem>>, vector<16x16x8xf32>
    %32 = vector.shape_cast %31 : vector<16x16x8xf32> to vector<256x8xf32>
    %33 = arith.truncf %32 : vector<256x8xf32> to vector<256x8xbf16>
    %c0_33 = arith.constant 0 : index
    %c32 = arith.constant 32 : index
    %34 = vector.load %arg12[%c0_33, %c32] : memref<256x72xbf16, #tpu.memory_space<vmem>>, vector<256x8xbf16>
    tpu.vector_store %arg12[%c0_33, %c32], %33 {strides = array<i32>} : memref<256x72xbf16, #tpu.memory_space<vmem>>, vector<256x8xbf16>,
    %c1_34 = arith.constant 1 : index
    %c2_35 = arith.constant 2 : index
    %c0_36 = arith.constant 0 : index
    %35 = vector.load %arg11[%c1_34, %c2_35, %c0_36] : memref<18x18x8xf32, #tpu.memory_space<vmem>>, vector<16x16x8xf32>
    %36 = vector.shape_cast %35 : vector<16x16x8xf32> to vector<256x8xf32>
    %37 = arith.truncf %36 : vector<256x8xf32> to vector<256x8xbf16>
    %c0_37 = arith.constant 0 : index
    %c40 = arith.constant 40 : index
    %38 = vector.load %arg12[%c0_37, %c40] : memref<256x72xbf16, #tpu.memory_space<vmem>>, vector<256x8xbf16>
    tpu.vector_store %arg12[%c0_37, %c40], %37 {strides = array<i32>} : memref<256x72xbf16, #tpu.memory_space<vmem>>, vector<256x8xbf16>,
    %c2_38 = arith.constant 2 : index
    %c0_39 = arith.constant 0 : index
    %c0_40 = arith.constant 0 : index
    %39 = vector.load %arg11[%c2_38, %c0_39, %c0_40] : memref<18x18x8xf32, #tpu.memory_space<vmem>>, vector<16x16x8xf32>
    %40 = vector.shape_cast %39 : vector<16x16x8xf32> to vector<256x8xf32>
    %41 = arith.truncf %40 : vector<256x8xf32> to vector<256x8xbf16>
    %c0_41 = arith.constant 0 : index
    %c48 = arith.constant 48 : index
    %42 = vector.load %arg12[%c0_41, %c48] : memref<256x72xbf16, #tpu.memory_space<vmem>>, vector<256x8xbf16>
    tpu.vector_store %arg12[%c0_41, %c48], %41 {strides = array<i32>} : memref<256x72xbf16, #tpu.memory_space<vmem>>, vector<256x8xbf16>,
    %c2_42 = arith.constant 2 : index
    %c1_43 = arith.constant 1 : index
    %c0_44 = arith.constant 0 : index
    %43 = vector.load %arg11[%c2_42, %c1_43, %c0_44] : memref<18x18x8xf32, #tpu.memory_space<vmem>>, vector<16x16x8xf32>
    %44 = vector.shape_cast %43 : vector<16x16x8xf32> to vector<256x8xf32>
    %45 = arith.truncf %44 : vector<256x8xf32> to vector<256x8xbf16>
    %c0_45 = arith.constant 0 : index
    %c56 = arith.constant 56 : index
    %46 = vector.load %arg12[%c0_45, %c56] : memref<256x72xbf16, #tpu.memory_space<vmem>>, vector<256x8xbf16>
    tpu.vector_store %arg12[%c0_45, %c56], %45 {strides = array<i32>} : memref<256x72xbf16, #tpu.memory_space<vmem>>, vector<256x8xbf16>,
    %c2_46 = arith.constant 2 : index
    %c2_47 = arith.constant 2 : index
    %c0_48 = arith.constant 0 : index
    %47 = vector.load %arg11[%c2_46, %c2_47, %c0_48] : memref<18x18x8xf32, #tpu.memory_space<vmem>>, vector<16x16x8xf32>
    %48 = vector.shape_cast %47 : vector<16x16x8xf32> to vector<256x8xf32>
    %49 = arith.truncf %48 : vector<256x8xf32> to vector<256x8xbf16>
    %c0_49 = arith.constant 0 : index
    %c64 = arith.constant 64 : index
    %50 = vector.load %arg12[%c0_49, %c64] : memref<256x72xbf16, #tpu.memory_space<vmem>>, vector<256x8xbf16>
    tpu.vector_store %arg12[%c0_49, %c64], %49 {strides = array<i32>} : memref<256x72xbf16, #tpu.memory_space<vmem>>, vector<256x8xbf16>,
    %c0_50 = arith.constant 0 : index
    %c0_51 = arith.constant 0 : index
    %51 = vector.load %arg12[%c0_50, %c0_51] : memref<256x72xbf16, #tpu.memory_space<vmem>>, vector<256x72xbf16>
    %c0_52 = arith.constant 0 : index
    %c0_53 = arith.constant 0 : index
    %52 = vector.load %arg4[%c0_52, %c0_53] : memref<72x8xbf16, #tpu.memory_space<vmem>>, vector<72x8xbf16>
    %cst_54 = arith.constant dense<0.000000e+00> : vector<256x8xf32>
    %53 = tpu.matmul %51, %52, %cst_54 {dimension_numbers = #tpu.dot_dimension_numbers<[1], [0], [0], [1], [0, 0, 1, 1], [], []>} : vector<256x72xbf16>, vector<72x8xbf16>, vector<256x8xf32> -> vector<256x8xf32>
    %c0_55 = arith.constant 0 : index
    %c0_56 = arith.constant 0 : index
    %54 = vector.load %arg5[%c0_55, %c0_56] : memref<1x8xf32, #tpu.memory_space<vmem>>, vector<1x8xf32>
    %55 = vector.broadcast %54 : vector<1x8xf32> to vector<256x8xf32>
    %56 = arith.addf %53, %55 : vector<256x8xf32>
    %cst_57 = arith.constant 0.000000e+00 : f32
    %57 = vector.broadcast %cst_57 : f32 to vector<256x8xf32>
    %58 = arith.maximumf %56, %57 : vector<256x8xf32>
    %59 = arith.truncf %58 : vector<256x8xf32> to vector<256x8xbf16>
    %c0_58 = arith.constant 0 : index
    %c0_59 = arith.constant 0 : index
    %60 = vector.load %arg6[%c0_58, %c0_59] : memref<8x32xbf16, #tpu.memory_space<vmem>>, vector<8x32xbf16>
    %cst_60 = arith.constant dense<0.000000e+00> : vector<256x32xf32>
    %61 = tpu.matmul %59, %60, %cst_60 {dimension_numbers = #tpu.dot_dimension_numbers<[1], [0], [0], [1], [0, 0, 1, 1], [], []>} : vector<256x8xbf16>, vector<8x32xbf16>, vector<256x32xf32> -> vector<256x32xf32>
    %c0_61 = arith.constant 0 : index
    %c0_62 = arith.constant 0 : index
    %62 = vector.load %arg7[%c0_61, %c0_62] : memref<1x32xf32, #tpu.memory_space<vmem>>, vector<1x32xf32>
    %63 = vector.broadcast %62 : vector<1x32xf32> to vector<256x32xf32>
    %64 = arith.addf %61, %63 : vector<256x32xf32>
    %c0_63 = arith.constant 0 : index
    %c0_64 = arith.constant 0 : index
    %65 = vector.load %arg8[%c0_63, %c0_64] : memref<4x32xbf16, #tpu.memory_space<vmem>>, vector<4x32xbf16>
    %cst_65 = arith.constant dense<0.000000e+00> : vector<256x32xf32>
    %66 = tpu.matmul %3, %65, %cst_65 {dimension_numbers = #tpu.dot_dimension_numbers<[1], [0], [0], [1], [0, 0, 1, 1], [], []>} : vector<256x4xbf16>, vector<4x32xbf16>, vector<256x32xf32> -> vector<256x32xf32>
    %c0_66 = arith.constant 0 : index
    %c0_67 = arith.constant 0 : index
    %67 = vector.load %arg9[%c0_66, %c0_67] : memref<1x32xf32, #tpu.memory_space<vmem>>, vector<1x32xf32>
    %68 = vector.broadcast %67 : vector<1x32xf32> to vector<256x32xf32>
    %69 = arith.addf %66, %68 : vector<256x32xf32>
    %70 = arith.addf %64, %69 : vector<256x32xf32>
    %cst_68 = arith.constant 0.000000e+00 : f32
    %71 = vector.broadcast %cst_68 : f32 to vector<256x32xf32>
    %72 = arith.maximumf %70, %71 : vector<256x32xf32>
    %73 = vector.shape_cast %72 : vector<256x32xf32> to vector<16x16x32xf32>
    %c0_69 = arith.constant 0 : index
    %c0_70 = arith.constant 0 : index
    %c0_71 = arith.constant 0 : index
    %c0_72 = arith.constant 0 : index
    %74 = vector.load %arg10[%c0_69, %c0_70, %c0_71, %c0_72] : memref<1x16x16x32xf32, #tpu.memory_space<vmem>>, vector<1x16x16x32xf32>
    %75 = vector.shape_cast %74 : vector<1x16x16x32xf32> to vector<16x16x32xf32>
    %76 = vector.shape_cast %73 : vector<16x16x32xf32> to vector<1x16x16x32xf32>
    tpu.vector_store %arg10[%c0_69, %c0_70, %c0_71, %c0_72], %76 {strides = array<i32>} : memref<1x16x16x32xf32, #tpu.memory_space<vmem>>, vector<1x16x16x32xf32>,
    return
  }
  func.func @transform_0(%arg0: i32) -> (i32, i32, i32, i32) {
    %c0_i32 = arith.constant 0 : i32
    %c0_i32_0 = arith.constant 0 : i32
    %c0_i32_1 = arith.constant 0 : i32
    %c0_i32_2 = arith.constant 0 : i32
    return %arg0, %c0_i32, %c0_i32_0, %c0_i32_1 : i32, i32, i32, i32
  }
  func.func @transform_1(%arg0: i32) -> (i32, i32) {
    %c0_i32 = arith.constant 0 : i32
    %c0_i32_0 = arith.constant 0 : i32
    %c0_i32_1 = arith.constant 0 : i32
    return %c0_i32, %c0_i32_0 : i32, i32
  }
  func.func @transform_2(%arg0: i32) -> (i32, i32) {
    %c0_i32 = arith.constant 0 : i32
    %c0_i32_0 = arith.constant 0 : i32
    %c0_i32_1 = arith.constant 0 : i32
    return %c0_i32, %c0_i32_0 : i32, i32
  }
  func.func @transform_3(%arg0: i32) -> (i32, i32) {
    %c0_i32 = arith.constant 0 : i32
    %c0_i32_0 = arith.constant 0 : i32
    %c0_i32_1 = arith.constant 0 : i32
    return %c0_i32, %c0_i32_0 : i32, i32
  }
  func.func @transform_4(%arg0: i32) -> (i32, i32) {
    %c0_i32 = arith.constant 0 : i32
    %c0_i32_0 = arith.constant 0 : i32
    %c0_i32_1 = arith.constant 0 : i32
    return %c0_i32, %c0_i32_0 : i32, i32
  }
  func.func @transform_5(%arg0: i32) -> (i32, i32) {
    %c0_i32 = arith.constant 0 : i32
    %c0_i32_0 = arith.constant 0 : i32
    %c0_i32_1 = arith.constant 0 : i32
    return %c0_i32, %c0_i32_0 : i32, i32
  }
  func.func @transform_6(%arg0: i32) -> (i32, i32) {
    %c0_i32 = arith.constant 0 : i32
    %c0_i32_0 = arith.constant 0 : i32
    %c0_i32_1 = arith.constant 0 : i32
    return %c0_i32, %c0_i32_0 : i32, i32
  }
  func.func @transform_7(%arg0: i32) -> (i32, i32) {
    %c0_i32 = arith.constant 0 : i32
    %c0_i32_0 = arith.constant 0 : i32
    %c0_i32_1 = arith.constant 0 : i32
    return %c0_i32, %c0_i32_0 : i32, i32
  }
  func.func @transform_8(%arg0: i32) -> (i32, i32) {
    %c0_i32 = arith.constant 0 : i32
    %c0_i32_0 = arith.constant 0 : i32
    %c0_i32_1 = arith.constant 0 : i32
    return %c0_i32, %c0_i32_0 : i32, i32
  }
  func.func @transform_9(%arg0: i32) -> (i32, i32, i32, i32) {
    %c0_i32 = arith.constant 0 : i32
    %c0_i32_0 = arith.constant 0 : i32
    %c0_i32_1 = arith.constant 0 : i32
    %c0_i32_2 = arith.constant 0 : i32
    return %arg0, %c0_i32, %c0_i32_0, %c0_i32_1 : i32, i32, i32, i32
  }
}

</mosaic_0001>

<bundles_post_ra>
// kernel: tpu_custom_call.1
= control target key start
LH: loop header
LB: loop body
LE: loop exit
PB: predicated region body
PF: predicated region fallthrough
CT: control target
= control target key end

     0   :  { %14 = vsyncpa [#allocation5], 0  ;;  %s4210_s0 = inlined_call_operand.vmem [shape: f32[2,16,16,4], index: 0, kind: input, shape index: {}]   ;;  %s4211_s1 = inlined_call_operand.vmem [shape: bf16[4,8], index: 1, kind: input, shape index: {}]   ;;  %s4212_s2 = inlined_call_operand.vmem [shape: f32[1,8], index: 2, kind: input, shape index: {}]   ;;  %s4213_s3 = inlined_call_operand.vmem [shape: bf16[72,8], index: 3, kind: input, shape index: {}]   ;;  %s4214_s4 = inlined_call_operand.vmem [shape: f32[1,8], index: 4, kind: input, shape index: {}]   ;;  %s4215_s5 = inlined_call_operand.vmem [shape: bf16[8,32], index: 5, kind: input, shape index: {}]   ;;  %s4216_s6 = inlined_call_operand.vmem [shape: f32[1,32], index: 6, kind: input, shape index: {}]   ;;  %s4217_s7 = inlined_call_operand.vmem [shape: bf16[4,32], index: 7, kind: input, shape index: {}]   ;;  %s4218_s8 = inlined_call_operand.vmem [shape: f32[1,32], index: 8, kind: input, shape index: {}]   ;;  %s4219_s9 = inlined_call_operand.hbm [shape: f32[2,16,16,32], index: 9, kind: output, shape index: {}]  }
   0x1   :  { %16 = vsyncpa [#allocation5 + $0x1], 0  ;;  %s3288_s30 = smov 0   ;;  %s3290_s10 = smov 0  }
   0x2   :  { %s3292_s11 = smov 0   ;;  %s3294_s12 = smov 0  }
   0x3 LB: > { %s3309_s13 = sadd.s32 4294967295, %s3225_s12   ;;  %s2706_s14 = sadd.s32 4294967294, %s3225_s12   ;;  %s3225_s12 = sphi %s3294_s12, %s4225_s12   ;;  %s3221_s11 = sphi %s3292_s11, %s4224_s11   ;;  %s3217_s10 = sphi %s3290_s10, %s4223_s10   ;;  %s3213_s30 = sphi %s3288_s30, %s4222_s30  }
   0x4   : > { %s3313_s15 = sadd.s32 1, %s3225_s12   ;;  %s223_s16 = sadd.s32 1, %s3221_s11 }
   0x5   : > { %s220_s17 = ssub.s32 %s3225_s12, %s3313_s15  ;;  %p233_p0 = scmp.ne.s32.totalorder %s3221_s11, %s3217_s10 }
   0x6   : > { %p221_p1 = scmp.eq.s32.totalorder %s220_s17, 0  ;;  %p234_p2 = scmp.eq.s32.totalorder %s3309_s13, 1 }
   0x7   : > { %p239_p3 = scmp.ne.s32.totalorder %s3217_s10, %s3213_s30  ;;  %p240_p4 = scmp.eq.s32.totalorder %s2706_s14, 1 }
   0x8   : > { %s3324_s18 = scalar_select %p221_p1, %s3221_s11, %s223_s16  }
   0x9   : > { %p3326_p5 = por %p234_p2, %p233_p0  ;;  %p3330_p6 = por %p240_p4, %p239_p3 }
   0xa   : > { %p2709_p7 = scmp.ge.s32.totalorder %s3225_s12, 1  ;;  %p290_p8 = scmp.lt.s32.totalorder %s3225_s12, 3 }
   0xc   : > { %p291_p9 = pnand %p2709_p7, %p290_p8 }
   0xd   : > { %v380_v0 = vld [vmem:[%s4211_s1] sm:$0x3] (!%p291_p9)  ;;  %vm437_vm0 = vcmask (!%p291_p9), 1041408   ;;  %p326_p10 = scmp.lt.s32.totalorder (!%p291_p9), %s3309_s13, 1  ;;  %vm388_vm1 = vcmask (!%p291_p9), 31744   ;;  %vm634_vm2 = vcmask (!%p291_p9), 64512  }
   0xe   : > { %294 = sbr.rel (%p291_p9) target bundleno = 1150 (0x47e), region = 56  ;;  %3105 = vmatprep.subr.msk.bf16.mxu1 (!%p291_p9), %vm437_vm0, %v380_v0  ;;  %v439_v1 = vsel (!%p291_p9), %vm437_vm0, %v380_v0, 0  ;;  %vm637_vm3 = vcmask (!%p291_p9), 58368   ;;  %v3227_v49 = vmov (!%p291_p9), 0.0   ;;  %s3228_s28 = smov (!%p291_p9), 16   ;;  %vm899_vm4 = vcmask (!%p291_p9), 130112  }
   0xf   : > { %2866 = vmatpush3.bf16.msra.mxu1 (!%p291_p9), %v439_v1  ;;  %642 = vst.msk [vmem:[#allocation2 + $0x30] sm:$0xff] (!%p291_p9), %vm634_vm2, %v3227_v49  ;;  %643 = vst.msk [vmem:[#allocation2 + $0x38] sm:$0xff] (!%p291_p9), %vm634_vm2, %v3227_v49  ;;  %s3229_s29 = smov (!%p291_p9), 8   ;;  %s3230_s14 = smov (!%p291_p9), 48   ;;  %v3504_v62 = vld [vmem:[%s4212_s2] ss:$0 sm:$0xff] (!%p291_p9) }
  0x10   : > { %635 = vst.msk [vmem:[#allocation2] sm:$0xff] (!%p291_p9), %vm634_vm2, %v3227_v49  ;;  %636 = vst.msk [vmem:[#allocation2 + $0x8] sm:$0xff] (!%p291_p9), %vm634_vm2, %v3227_v49  ;;  %vm1028_vm5 = vcmask (!%p291_p9), 195712   ;;  %s3231_s21 = smov (!%p291_p9), 24   ;;  %s3232_s22 = smov (!%p291_p9), 56   ;;  %vm1928_vm6 = vcmask (!%p291_p9), 1043456  }
  0x11   : > { %639 = vst.msk [vmem:[#allocation2 + $0x18] sm:$0xff] (!%p291_p9), %vm634_vm2, %v3227_v49  ;;  %640 = vst.msk [vmem:[#allocation2 + $0x20] sm:$0xff] (!%p291_p9), %vm634_vm2, %v3227_v49  ;;  %s3235_s25 = smov (!%p291_p9), 40   ;;  %vm1157_vm7 = vcmask (!%p291_p9), 261312   ;;  %vm1286_vm8 = vcmask (!%p291_p9), 326912   ;;  %vm1415_vm9 = vcmask (!%p291_p9), 392512  }
  0x12   : > { %645 = vst.msk [vmem:[#allocation2 + $0x48] sm:$0xff] (!%p291_p9), %vm634_vm2, %v3227_v49  ;;  %646 = vst.msk [vmem:[#allocation2 + $0x50] sm:$0xff] (!%p291_p9), %vm634_vm2, %v3227_v49  ;;  %vm1545_vm10 = vcmask (!%p291_p9), 458112   ;;  %vm1674_vm11 = vcmask (!%p291_p9), 523712   ;;  %vm1803_vm12 = vcmask (!%p291_p9), 589312   ;;  %vm1879_vm13 = vcmask (!%p291_p9), 588800  }
  0x13   : > { %648 = vst.msk [vmem:[#allocation2 + $0x60] sm:$0xff] (!%p291_p9), %vm634_vm2, %v3227_v49  ;;  %649 = vst.msk [vmem:[#allocation2 + $0x68] sm:$0xff] (!%p291_p9), %vm634_vm2, %v3227_v49  ;;  %vm2597_vm14 = vcmask (!%p291_p9), 261120   ;;  %s3236_s17 = smov (!%p291_p9), [#allocation4]  }
  0x14   : > { %651 = vst.msk [vmem:[#allocation2 + $0x78] sm:$0xff] (!%p291_p9), %vm634_vm2, %v3227_v49  ;;  %652 = vst.msk [vmem:[#allocation2 + $0x80] sm:$0xff] (!%p291_p9), %vm634_vm2, %v3227_v49  ;;  %s3167_s26 = sshll.u32 (!%p291_p9), %s3236_s17, 4  ;;  %s3168_s26 = int_to_ptr.vmem [resolvable:$false] %s3167_s26 }
  0x15   : > { %s327_s23 = scalar_select %p326_p10, %s3309_s13, 1  ;;  %654 = vst.msk [vmem:[#allocation2 + $0x90] sm:$0xff] %vm634_vm2, %v3227_v49  ;;  %655 = vst.msk [vmem:[#allocation2 + $0x98] sm:$0xff] %vm634_vm2, %v3227_v49 }
  0x16   : > { %657 = vst.msk [vmem:[#allocation2 + $0xa8] sm:$0xff] %vm634_vm2, %v3227_v49  ;;  %658 = vst.msk [vmem:[#allocation2 + $0xb0] sm:$0xff] %vm634_vm2, %v3227_v49 }
  0x17   : > { %s2791_s24 = sshll.u32 %s327_s23, 8  ;;  %660 = vst.msk [vmem:[#allocation2 + $0xc0] sm:$0xff] %vm634_vm2, %v3227_v49  ;;  %661 = vst.msk [vmem:[#allocation2 + $0xc8] sm:$0xff] %vm634_vm2, %v3227_v49  ;;  %v916_v51 = vld [vmem:[#allocation2 + $0x2] sm:$0xff]  ;;  %s3233_s23 = smov 32  }
  0x18   : > { %s3346_s27 = scalar_lea.vmem %s4210_s0, %s2791_s24  ;;  %663 = vst.msk [vmem:[#allocation2 + $0xd8] sm:$0xff] %vm634_vm2, %v3227_v49  ;;  %664 = vst.msk [vmem:[#allocation2 + $0xe0] sm:$0xff] %vm634_vm2, %v3227_v49  ;;  %v787_v56 = vld [vmem:[#allocation2 + $0x1] sm:$0xff]  ;;  %s3234_s24 = smov 64  }
  0x19   : > { %v332_v2 = vld [vmem:[%s3346_s27] sm:$0xff]  ;;  %v333_v3 = vld [vmem:[%s3346_s27 + $0x8] sm:$0xff]  ;;  %v334_v4 = vld [vmem:[%s3346_s27 + $0x10] sm:$0xff]  ;;  %666 = vst.msk [vmem:[#allocation2 + $0xf0] sm:$0xff] %vm634_vm2, %v3227_v49 }
  0x1a   : > { %v3351_v5 = vpack.c.bf16 %v333_v3, %v332_v2  ;;  %v335_v6 = vld [vmem:[%s3346_s27 + $0x18] sm:$0xff]  ;;  %v336_v7 = vld [vmem:[%s3346_s27 + $0x20] sm:$0xff]  ;;  %v337_v8 = vld [vmem:[%s3346_s27 + $0x28] sm:$0xff]  ;;  %667 = vst.msk [vmem:[#allocation2 + $0xf8] sm:$0xff] %vm634_vm2, %v3227_v49 }
  0x1b   : > { %v3356_v9 = vpack.c.bf16 %v335_v6, %v334_v4  ;;  %v3358_v10 = vpack.c.bf16 %v337_v8, %v336_v7  ;;  %v338_v11 = vld [vmem:[%s3346_s27 + $0x30] sm:$0xff]  ;;  %v339_v12 = vld [vmem:[%s3346_s27 + $0x38] sm:$0xff]  ;;  %v340_v13 = vld [vmem:[%s3346_s27 + $0x40] sm:$0xff]  ;;  %669 = vst.msk [vmem:[#allocation2 + $0x108] sm:$0xff] %vm634_vm2, %v3227_v49 }
  0x1c   : > { %2867 = vmatprep.mubr.msk.bf16.mxu1 %vm388_vm1, %v3351_v5  ;;  %v341_v14 = vld [vmem:[%s3346_s27 + $0x48] sm:$0xff]  ;;  %v3370_v15 = vpack.c.bf16 %v339_v12, %v338_v11  ;;  %v342_v17 = vld [vmem:[%s3346_s27 + $0x50] sm:$0xff]  ;;  %v343_v18 = vld [vmem:[%s3346_s27 + $0x58] sm:$0xff]  ;;  %670 = vst.msk [vmem:[#allocation2 + $0x110] sm:$0xff] %vm634_vm2, %v3227_v49 }
  0x1d   : > { %2868 = vmatmul.mubr.msk.bf16.vlgmr.msra.gmra.mrb[0].mxu1 %vm388_vm1, %v3356_v9  ;;  %v3372_v16 = vpack.c.bf16 %v341_v14, %v340_v13  ;;  %v344_v19 = vld [vmem:[%s3346_s27 + $0x60] sm:$0xff]  ;;  %v345_v20 = vld [vmem:[%s3346_s27 + $0x68] sm:$0xff]  ;;  %v3382_v21 = vpack.c.bf16 %v343_v18, %v342_v17  ;;  %v346_v23 = vld [vmem:[%s3346_s27 + $0x70] sm:$0xff]  ;;  %672 = vst.msk [vmem:[#allocation2 + $0x120] sm:$0xff] %vm634_vm2, %v3227_v49 }
  0x1e   : > { %2871 = vmatprep.mubr.msk.bf16.mxu1 %vm388_vm1, %v3358_v10  ;;  %v3384_v22 = vpack.c.bf16 %v345_v20, %v344_v19  ;;  %v347_v24 = vld [vmem:[%s3346_s27 + $0x78] sm:$0xff]  ;;  %v348_v25 = vld [vmem:[%s3346_s27 + $0x80] sm:$0xff]  ;;  %v349_v26 = vld [vmem:[%s3346_s27 + $0x88] sm:$0xff]  ;;  %673 = vst.msk [vmem:[#allocation2 + $0x128] sm:$0xff] %vm634_vm2, %v3227_v49 }
  0x1f   : > { %v3394_v27 = vpack.c.bf16 %v347_v24, %v346_v23  ;;  %v3396_v28 = vpack.c.bf16 %v349_v26, %v348_v25  ;;  %v350_v29 = vld [vmem:[%s3346_s27 + $0x90] sm:$0xff]  ;;  %v351_v30 = vld [vmem:[%s3346_s27 + $0x98] sm:$0xff]  ;;  %v352_v31 = vld [vmem:[%s3346_s27 + $0xa0] sm:$0xff]  ;;  %675 = vst.msk [vmem:[#allocation2 + $0x138] sm:$0xff] %vm634_vm2, %v3227_v49 }
  0x20   : > { %v353_v32 = vld [vmem:[%s3346_s27 + $0xa8] sm:$0xff]  ;;  %v3406_v33 = vpack.c.bf16 %v351_v30, %v350_v29  ;;  %v354_v35 = vld [vmem:[%s3346_s27 + $0xb0] sm:$0xff]  ;;  %v355_v36 = vld [vmem:[%s3346_s27 + $0xb8] sm:$0xff]  ;;  %676 = vst.msk [vmem:[#allocation2 + $0x140] sm:$0xff] %vm634_vm2, %v3227_v49 }
  0x21   : > { %v3408_v34 = vpack.c.bf16 %v353_v32, %v352_v31  ;;  %v356_v37 = vld [vmem:[%s3346_s27 + $0xc0] sm:$0xff]  ;;  %v357_v38 = vld [vmem:[%s3346_s27 + $0xc8] sm:$0xff]  ;;  %v3418_v39 = vpack.c.bf16 %v355_v36, %v354_v35  ;;  %v358_v41 = vld [vmem:[%s3346_s27 + $0xd0] sm:$0xff]  ;;  %678 = vst.msk [vmem:[#allocation2 + $0x150] sm:$0xff] %vm634_vm2, %v3227_v49 }
  0x22   : > { %v3420_v40 = vpack.c.bf16 %v357_v38, %v356_v37  ;;  %v359_v42 = vld [vmem:[%s3346_s27 + $0xd8] sm:$0xff]  ;;  %v360_v44 = vld [vmem:[%s3346_s27 + $0xe0] sm:$0xff]  ;;  %v361_v45 = vld [vmem:[%s3346_s27 + $0xe8] sm:$0xff]  ;;  %679 = vst.msk [vmem:[#allocation2 + $0x158] sm:$0xff] %vm634_vm2, %v3227_v49 }
  0x23   : > { %v3428_v43 = vpack.c.bf16 %v359_v42, %v358_v41  ;;  %v3434_v46 = vpack.c.bf16 %v361_v45, %v360_v44  ;;  %v362_v47 = vld [vmem:[%s3346_s27 + $0xf0] sm:$0xff]  ;;  %v363_v48 = vld [vmem:[%s3346_s27 + $0xf8] sm:$0xff]  ;;  %681 = vst.msk [vmem:[#allocation2 + $0x168] sm:$0xff] %vm634_vm2, %v3227_v49  ;;  %682 = vst.msk [vmem:[#allocation2 + $0x170] sm:$0xff] %vm634_vm2, %v3227_v49  ;;  %s323_s27 = sand.u32 1, %s3217_s10  }
  0x24   : > { %684 = vst.msk [vmem:[#allocation2 + $0x180] sm:$0xff] %vm634_vm2, %v3227_v49  ;;  %685 = vst.msk [vmem:[#allocation2 + $0x188] sm:$0xff] %vm634_vm2, %v3227_v49  ;;  %v3474_v50 = vpack.c.bf16 %v363_v48, %v362_v47  ;;  %v724_v60 = vld [vmem:[#allocation2 + $0x8] sm:$0xff]  ;;  %v723_v61 = vld [vmem:[#allocation2] sm:$0xff] }
  0x25   : > { %2872 = vmatmul.mubr.msk.bf16.gmra.mrb[4].mxu1 %vm388_vm1, %v3370_v15  ;;  %687 = vst.msk [vmem:[#allocation2 + $0x198] sm:$0xff] %vm634_vm2, %v3227_v49  ;;  %688 = vst.msk [vmem:[#allocation2 + $0x1a0] sm:$0xff] %vm634_vm2, %v3227_v49  ;;  %v755_v0 = vpack.c.bf16 %v724_v60, %v723_v61 }
  0x26   : > { %2875 = vmatprep.mubr.msk.bf16.mxu1 %vm388_vm1, %v3372_v16  ;;  %644 = vst.msk [vmem:[#allocation2 + $0x40] sm:$0x3] %vm637_vm3, %v3227_v49  ;;  %638 = vst.msk [vmem:[#allocation2 + $0x10] sm:$0x3] %vm637_vm3, %v3227_v49 }
  0x27   : > { %641 = vst.msk [vmem:[#allocation2 + $0x28] sm:$0x3] %vm637_vm3, %v3227_v49  ;;  %647 = vst.msk [vmem:[#allocation2 + $0x58] sm:$0x3] %vm637_vm3, %v3227_v49 }
  0x28   : > { %650 = vst.msk [vmem:[#allocation2 + $0x70] sm:$0x3] %vm637_vm3, %v3227_v49  ;;  %653 = vst.msk [vmem:[#allocation2 + $0x88] sm:$0x3] %vm637_vm3, %v3227_v49 }
  0x29   : > { %656 = vst.msk [vmem:[#allocation2 + $0xa0] sm:$0x3] %vm637_vm3, %v3227_v49  ;;  %659 = vst.msk [vmem:[#allocation2 + $0xb8] sm:$0x3] %vm637_vm3, %v3227_v49 }
  0x2a   : > { %662 = vst.msk [vmem:[#allocation2 + $0xd0] sm:$0x3] %vm637_vm3, %v3227_v49  ;;  %665 = vst.msk [vmem:[#allocation2 + $0xe8] sm:$0x3] %vm637_vm3, %v3227_v49 }
  0x2b   : > { %668 = vst.msk [vmem:[#allocation2 + $0x100] sm:$0x3] %vm637_vm3, %v3227_v49  ;;  %671 = vst.msk [vmem:[#allocation2 + $0x118] sm:$0x3] %vm637_vm3, %v3227_v49 }
  0x2c   : > { %674 = vst.msk [vmem:[#allocation2 + $0x130] sm:$0x3] %vm637_vm3, %v3227_v49  ;;  %677 = vst.msk [vmem:[#allocation2 + $0x148] sm:$0x3] %vm637_vm3, %v3227_v49  ;;  %v1463_v54 = vld [vmem:[#allocation2 + $0x198] sm:$0xff]  ;;  %v1464_v55 = vld [vmem:[#allocation2 + $0x1a0] sm:$0xff] }
  0x2d   : > { %2876 = vmatmul.mubr.msk.bf16.gmra.mrb[8].mxu1 %vm388_vm1, %v3382_v21  ;;  %680 = vst.msk [vmem:[#allocation2 + $0x160] sm:$0x3] %vm637_vm3, %v3227_v49  ;;  %683 = vst.msk [vmem:[#allocation2 + $0x178] sm:$0x3] %vm637_vm3, %v3227_v49  ;;  %v917_v52 = vld [vmem:[#allocation2 + $0xa] sm:$0xff]  ;;  %v1480_v57 = vpack.c.bf16 %v1464_v55, %v1463_v54 }
  0x2e   : > { %2879 = vmatprep.mubr.msk.bf16.mxu1 %vm388_vm1, %v3384_v22  ;;  %686 = vst.msk [vmem:[#allocation2 + $0x190] sm:$0x3] %vm637_vm3, %v3227_v49  ;;  %689 = vst.msk [vmem:[#allocation2 + $0x1a8] sm:$0x3] %vm637_vm3, %v3227_v49  ;;  %v948_v53 = vpack.c.bf16 %v917_v52, %v916_v51  ;;  %v788_v58 = vld [vmem:[#allocation2 + $0x9] sm:$0xff] }
  0x2f   : > { %v819_v59 = vpack.c.bf16 %v788_v58, %v787_v56  ;;  %771 = vst.msk [vmem:[#allocation3] sm:$0xff] %vm634_vm2, %v755_v0 }
  0x30   : > { %980 = vrot.lane.b32.xlu1 %v948_v53, %s3228_s28 }
  0x31   : > { %851 = vrot.lane.b32.xlu0 %v819_v59, %s3229_s29 }
  0x34   : > { %1527 = vrot.lane.b32.xlu1 %v1480_v57, %s3230_s14 }
  0x35   : > { %2880 = vmatmul.mubr.msk.bf16.gmra.mrb[12].mxu1 %vm388_vm1, %v3394_v27 }
  0x36   : > { %2883 = vmatprep.mubr.msk.bf16.mxu1 %vm388_vm1, %v3396_v28 }
  0x3d   : > { %2884 = vmatmul.mubr.msk.bf16.gmra.mrb[16].mxu1 %vm388_vm1, %v3406_v33 }
  0x3e   : > { %2887 = vmatprep.mubr.msk.bf16.mxu1 %vm388_vm1, %v3408_v34 }
  0x45   : > { %2888 = vmatmul.mubr.msk.bf16.gmra.mrb[20].mxu1 %vm388_vm1, %v3418_v39 }
  0x46   : > { %2891 = vmatprep.mubr.msk.bf16.mxu1 %vm388_vm1, %v3420_v40 }
  0x4d   : > { %2892 = vmatmul.mubr.msk.bf16.gmra.mrb[24].mxu1 %vm388_vm1, %v3428_v43 }
  0x4e   : > { %2895 = vmatprep.mubr.msk.bf16.mxu1 %vm388_vm1, %v3434_v46 }
  0x55   : > { %2896 = vmatmul.mubr.msk.bf16.gmra.mrb[28].mxu1 %vm388_vm1, %v3474_v50 }
  0xa2   : > { %v981_v4 = vpop.permute.xlu1 %980 }
  0xa3   : > { %v852_v63 = vpop.permute.xlu0 %851 }
  0xa4   : > { %900 = vst.msk [vmem:[#allocation3] sm:$0xff] %vm899_vm4, %v852_v63 }
  0xa5   : > { %1029 = vst.msk [vmem:[#allocation3] sm:$0xff] %vm1028_vm5, %v981_v4 }
  0xf0   : > { %v2869_v1 = vpop.f32.mrb[0].mxu1 }
  0xf1   : > { %v484_v2 = vadd.f32 %v2869_v1, %v3504_v62  ;;  %v475_v3 = vpop.f32.mrb[1].mxu1 }
  0xf2   : > { %v476_v6 = vadd.f32 %v3504_v62, %v475_v3  ;;  %v2870_v7 = vpop.f32.mrb[2].mxu1 }
  0xf3   : > { %v604_v8 = vmax.f32 %v484_v2, 0.0  ;;  %v487_v11 = vadd.f32 %v2870_v7, %v3504_v62  ;;  %v478_v12 = vpop.f32.mrb[3].mxu1 }
  0xf4   : > { %v602_v13 = vmax.f32 %v476_v6, 0.0  ;;  %v479_v14 = vadd.f32 %v3504_v62, %v478_v12 }
  0xf5   : > { %693 = vst.msk [vmem:[#allocation2 + $0x31] sm:$0xff] %vm634_vm2, %v604_v8  ;;  %v605_v17 = vmax.f32 %v487_v11, 0.0 }
  0xf6   : > { %691 = vst.msk [vmem:[#allocation2 + $0x19] sm:$0xff] %vm634_vm2, %v602_v13  ;;  %v603_v18 = vmax.f32 %v479_v14, 0.0 }
  0xf7   : > { %694 = vst.msk [vmem:[#allocation2 + $0x39] sm:$0xff] %vm634_vm2, %v605_v17 }
  0xf8   : > { %692 = vst.msk [vmem:[#allocation2 + $0x21] sm:$0xff] %vm634_vm2, %v603_v18  ;;  %v2873_v19 = vpop.f32.mrb[4].mxu1 }
  0xf9   : > { %v500_v20 = vadd.f32 %v2873_v19, %v3504_v62  ;;  %v491_v23 = vpop.f32.mrb[5].mxu1 }
  0xfa   : > { %v492_v24 = vadd.f32 %v3504_v62, %v491_v23  ;;  %v2874_v25 = vpop.f32.mrb[6].mxu1 }
  0xfb   : > { %v608_v26 = vmax.f32 %v500_v20, 0.0  ;;  %v503_v29 = vadd.f32 %v2874_v25, %v3504_v62  ;;  %v494_v30 = vpop.f32.mrb[7].mxu1 }
  0xfc   : > { %v606_v31 = vmax.f32 %v492_v24, 0.0  ;;  %v495_v32 = vadd.f32 %v3504_v62, %v494_v30  ;;  %v1433_v36 = vld [vmem:[#allocation2 + $0x30] sm:$0xff] }
  0xfd   : > { %697 = vst.msk [vmem:[#allocation2 + $0x61] sm:$0xff] %vm634_vm2, %v608_v26  ;;  %v609_v35 = vmax.f32 %v503_v29, 0.0  ;;  %v1045_v44 = vld [vmem:[#allocation2 + $0x18] sm:$0xff] }
  0xfe   : > { %v1434_v37 = vld [vmem:[#allocation2 + $0x38] sm:$0xff]  ;;  %695 = vst.msk [vmem:[#allocation2 + $0x49] sm:$0xff] %vm634_vm2, %v606_v31  ;;  %v607_v38 = vmax.f32 %v495_v32, 0.0 }
  0xff   : > { %v1465_v41 = vpack.c.bf16 %v1434_v37, %v1433_v36  ;;  %698 = vst.msk [vmem:[#allocation2 + $0x69] sm:$0xff] %vm634_vm2, %v609_v35  ;;  %v1563_v42 = vld [vmem:[#allocation2 + $0x39] sm:$0xff]  ;;  %v1562_v52 = vld [vmem:[#allocation2 + $0x31] sm:$0xff]  ;;  %v919_v25 = vld [vmem:[#allocation2 + $0x22] sm:$0xff] }
 0x100   : > { %696 = vst.msk [vmem:[#allocation2 + $0x51] sm:$0xff] %vm634_vm2, %v607_v38  ;;  %v1046_v45 = vld [vmem:[#allocation2 + $0x20] sm:$0xff]  ;;  %v2877_v47 = vpop.f32.mrb[8].mxu1  ;;  %v1594_v55 = vpack.c.bf16 %v1563_v42, %v1562_v52  ;;  %v1691_v59 = vld [vmem:[#allocation2 + $0x32] sm:$0xff] }
 0x101   : > { %1497 = vrot.lane.b32.xlu0 %v1465_v41, %s3230_s14  ;;  %1111 = vrot.lane.b32.xlu1 %v1465_v41, %s3231_s21  ;;  %v3527_v48 = vpack.c.bf16 %v1046_v45, %v1045_v44  ;;  %v516_v49 = vadd.f32 %v2877_v47, %v3504_v62  ;;  %v507_v51 = vpop.f32.mrb[9].mxu1  ;;  %773 = vst.msk [vmem:[#allocation3 + $0x10] sm:$0xff] %vm634_vm2, %v1465_v41  ;;  %v1692_v60 = vld [vmem:[#allocation2 + $0x3a] sm:$0xff] }
 0x102   : > { %v508_v53 = vadd.f32 %v3504_v62, %v507_v51  ;;  %v2878_v54 = vpop.f32.mrb[10].mxu1  ;;  %v1723_v6 = vpack.c.bf16 %v1692_v60, %v1691_v59  ;;  %v918_v19 = vld [vmem:[#allocation2 + $0x1a] sm:$0xff] }
 0x103   : > { %v612_v56 = vmax.f32 %v516_v49, 0.0  ;;  %v519_v57 = vadd.f32 %v2878_v54, %v3504_v62  ;;  %v510_v58 = vpop.f32.mrb[11].mxu1  ;;  %772 = vst.msk [vmem:[#allocation3 + $0x8] sm:$0xff] %vm634_vm2, %v3527_v48  ;;  %v790_v26 = vld [vmem:[#allocation2 + $0x21] sm:$0xff]  ;;  %v789_v36 = vld [vmem:[#allocation2 + $0x19] sm:$0xff]  ;;  %v949_v41 = vpack.c.bf16 %v919_v25, %v918_v19 }
 0x104   : > { %v1051_v61 = vld [vmem:[#allocation2 + $0x60] sm:$0xff]  ;;  %v610_v63 = vmax.f32 %v508_v53, 0.0  ;;  %v511_v0 = vadd.f32 %v3504_v62, %v510_v58  ;;  %v820_v42 = vpack.c.bf16 %v790_v26, %v789_v36 }
 0x105   : > { %1626 = vrot.lane.b32.xlu0 %v1594_v55, %s3232_s22  ;;  %1240 = vrot.lane.b32.xlu1 %v1594_v55, %s3233_s23  ;;  %701 = vst.msk [vmem:[#allocation2 + $0x91] sm:$0xff] %vm634_vm2, %v612_v56  ;;  %v1435_v1 = vld [vmem:[#allocation2 + $0x48] sm:$0xff]  ;;  %v613_v2 = vmax.f32 %v519_v57, 0.0 }
 0x106   : > { %v1052_v3 = vld [vmem:[#allocation2 + $0x68] sm:$0xff]  ;;  %699 = vst.msk [vmem:[#allocation2 + $0x79] sm:$0xff] %vm634_vm2, %v610_v63  ;;  %v611_v4 = vmax.f32 %v511_v0, 0.0 }
 0x107   : > { %v3540_v7 = vpack.c.bf16 %v1052_v3, %v1051_v61  ;;  %v1436_v8 = vld [vmem:[#allocation2 + $0x50] sm:$0xff]  ;;  %702 = vst.msk [vmem:[#allocation2 + $0x99] sm:$0xff] %vm634_vm2, %v613_v2  ;;  %v1180_v53 = vld [vmem:[#allocation2 + $0x61] sm:$0xff] }
 0x108   : > { %v3543_v11 = vpack.c.bf16 %v1436_v8, %v1435_v1  ;;  %700 = vst.msk [vmem:[#allocation2 + $0x81] sm:$0xff] %vm634_vm2, %v611_v4  ;;  %v2881_v12 = vpop.f32.mrb[12].mxu1  ;;  %v1181_v54 = vld [vmem:[#allocation2 + $0x69] sm:$0xff] }
 0x109   : > { %1755 = vrot.lane.b32.xlu0 %v1723_v6, %s3234_s24  ;;  %1369 = vrot.lane.b32.xlu1 %v1723_v6, %s3235_s25  ;;  %v532_v13 = vadd.f32 %v2881_v12, %v3504_v62  ;;  %v523_v14 = vpop.f32.mrb[13].mxu1  ;;  %775 = vst.msk [vmem:[#allocation3 + $0x20] sm:$0xff] %vm634_vm2, %v3540_v7  ;;  %v1209_v0 = vpack.c.bf16 %v1181_v54, %v1180_v53  ;;  %v1309_v12 = vld [vmem:[#allocation2 + $0x62] sm:$0xff]  ;;  %v1565_v54 = vld [vmem:[#allocation2 + $0x51] sm:$0xff] }
 0x10a   : > { %v524_v17 = vadd.f32 %v3504_v62, %v523_v14  ;;  %v2882_v18 = vpop.f32.mrb[14].mxu1  ;;  %774 = vst.msk [vmem:[#allocation3 + $0x18] sm:$0xff] %vm634_vm2, %v3543_v11  ;;  %v1564_v53 = vld [vmem:[#allocation2 + $0x49] sm:$0xff] }
 0x10b   : > { %v616_v20 = vmax.f32 %v532_v13, 0.0  ;;  %v535_v23 = vadd.f32 %v2882_v18, %v3504_v62  ;;  %v526_v24 = vpop.f32.mrb[15].mxu1  ;;  %v1310_v13 = vld [vmem:[#allocation2 + $0x6a] sm:$0xff] }
 0x10c   : > { %v1055_v29 = vld [vmem:[#allocation2 + $0x90] sm:$0xff]  ;;  %v614_v30 = vmax.f32 %v524_v17, 0.0  ;;  %v527_v31 = vadd.f32 %v3504_v62, %v526_v24  ;;  %v3158_v17 = vld [vmem:[%s4213_s3] sm:$0xff]   ;;  %v3599_v24 = vpack.c.bf16 %v1310_v13, %v1309_v12 }
 0x10d   : > { %984 = vrot.lane.b32.xlu0 %v1723_v6, %s3228_s28  ;;  %855 = vrot.lane.b32.xlu1 %v1594_v55, %s3229_s29  ;;  %705 = vst.msk [vmem:[#allocation2 + $0xc1] sm:$0xff] %vm634_vm2, %v616_v20  ;;  %v1439_v32 = vld [vmem:[#allocation2 + $0x78] sm:$0xff]  ;;  %v617_v35 = vmax.f32 %v535_v23, 0.0 }
 0x10e   : > { %v1056_v37 = vld [vmem:[#allocation2 + $0x98] sm:$0xff]  ;;  %703 = vst.msk [vmem:[#allocation2 + $0xa9] sm:$0xff] %vm634_vm2, %v614_v30  ;;  %v615_v38 = vmax.f32 %v527_v31, 0.0  ;;  %2899 = vmatprep.subr.bf16.mxu1 %v3158_v17  ;;  %v3159_v30 = vld [vmem:[%s4213_s3 + $0x8] sm:$0xff]  }
 0x10f   : > { %v3560_v44 = vpack.c.bf16 %v1056_v37, %v1055_v29  ;;  %v1440_v45 = vld [vmem:[#allocation2 + $0x80] sm:$0xff]  ;;  %706 = vst.msk [vmem:[#allocation2 + $0xc9] sm:$0xff] %vm634_vm2, %v617_v35  ;;  %2900 = vmatpush3.bf16.msra.mxu1 %v3158_v17 }
 0x110   : > { %v3563_v47 = vpack.c.bf16 %v1440_v45, %v1439_v32  ;;  %704 = vst.msk [vmem:[#allocation2 + $0xb1] sm:$0xff] %vm634_vm2, %v615_v38  ;;  %v2885_v49 = vpop.f32.mrb[16].mxu1  ;;  %2901 = vmatprep.subr.bf16.mxu1 %v3159_v30 }
 0x111   : > { %982 = vrot.lane.b32.xlu1 %v949_v41, %s3228_s28  ;;  %853 = vrot.lane.b32.xlu0 %v820_v42, %s3229_s29  ;;  %v548_v51 = vadd.f32 %v2885_v49, %v3504_v62  ;;  %v539_v52 = vpop.f32.mrb[17].mxu1  ;;  %777 = vst.msk [vmem:[#allocation3 + $0x30] sm:$0xff] %vm634_vm2, %v3560_v44 }
 0x112   : > { %v540_v55 = vadd.f32 %v3504_v62, %v539_v52  ;;  %v2886_v56 = vpop.f32.mrb[18].mxu1  ;;  %776 = vst.msk [vmem:[#allocation3 + $0x28] sm:$0xff] %vm634_vm2, %v3563_v47  ;;  %v3161_v52 = vld [vmem:[%s4213_s3 + $0x18] sm:$0xff]  }
 0x113   : > { %v620_v57 = vmax.f32 %v548_v51, 0.0  ;;  %v551_v58 = vadd.f32 %v2886_v56, %v3504_v62  ;;  %v542_v59 = vpop.f32.mrb[19].mxu1  ;;  %2902 = vmatpush3.bf16.msra.mxu1 %v3159_v30 }
 0x114   : > { %v1059_v60 = vld [vmem:[#allocation2 + $0xc0] sm:$0xff]  ;;  %v618_v61 = vmax.f32 %v540_v55, 0.0  ;;  %v543_v63 = vadd.f32 %v3504_v62, %v542_v59  ;;  %v1595_v59 = vpack.c.bf16 %v1565_v54, %v1564_v53 }
 0x115   : > { %1115 = vrot.lane.b32.xlu1 %v3540_v7, %s3231_s21  ;;  %1109 = vrot.lane.b32.xlu0 %v3527_v48, %s3231_s21  ;;  %709 = vst.msk [vmem:[#allocation2 + $0xf1] sm:$0xff] %vm634_vm2, %v620_v57  ;;  %v1443_v1 = vld [vmem:[#allocation2 + $0xa8] sm:$0xff]  ;;  %v621_v2 = vmax.f32 %v551_v58, 0.0 }
 0x116   : > { %v1060_v3 = vld [vmem:[#allocation2 + $0xc8] sm:$0xff]  ;;  %707 = vst.msk [vmem:[#allocation2 + $0xd9] sm:$0xff] %vm634_vm2, %v618_v61  ;;  %v619_v4 = vmax.f32 %v543_v63, 0.0 }
 0x117   : > { %v3582_v6 = vpack.c.bf16 %v1060_v3, %v1059_v60  ;;  %v1444_v8 = vld [vmem:[#allocation2 + $0xb0] sm:$0xff]  ;;  %710 = vst.msk [vmem:[#allocation2 + $0xf9] sm:$0xff] %vm634_vm2, %v621_v2  ;;  %v3162_v3 = vld [vmem:[%s4213_s3 + $0x20] ss:$0 sps:$4 sm:$0xff]  }
 0x118   : > { %v3585_v14 = vpack.c.bf16 %v1444_v8, %v1443_v1  ;;  %708 = vst.msk [vmem:[#allocation2 + $0xe1] sm:$0xff] %vm634_vm2, %v619_v4  ;;  %v2889_v48 = vpop.f32.mrb[20].mxu1  ;;  %v1930_v17 = vsel %vm1928_vm6, %v3162_v3, 0 }
 0x119   : > { %1244 = vrot.lane.b32.xlu1 %v1209_v0, %s3233_s23  ;;  %1238 = vrot.lane.b32.xlu0 %v820_v42, %s3233_s23  ;;  %v564_v18 = vadd.f32 %v2889_v48, %v3504_v62  ;;  %v555_v19 = vpop.f32.mrb[21].mxu1  ;;  %779 = vst.msk [vmem:[#allocation3 + $0x40] sm:$0xff] %vm634_vm2, %v3582_v6 }
 0x11a   : > { %v556_v20 = vadd.f32 %v3504_v62, %v555_v19  ;;  %v2890_v23 = vpop.f32.mrb[22].mxu1  ;;  %778 = vst.msk [vmem:[#allocation3 + $0x38] sm:$0xff] %vm634_vm2, %v3585_v14 }
 0x11b   : > { %v624_v25 = vmax.f32 %v564_v18, 0.0  ;;  %v567_v26 = vadd.f32 %v2890_v23, %v3504_v62  ;;  %v558_v29 = vpop.f32.mrb[23].mxu1  ;;  %v923_v23 = vld [vmem:[#allocation2 + $0x52] sm:$0xff] }
 0x11c   : > { %v1063_v31 = vld [vmem:[#allocation2 + $0xf0] sm:$0xff]  ;;  %v622_v32 = vmax.f32 %v556_v20, 0.0  ;;  %v559_v35 = vadd.f32 %v3504_v62, %v558_v29  ;;  %v1185_v29 = vld [vmem:[#allocation2 + $0x99] sm:$0xff] }
 0x11d   : > { %1373 = vrot.lane.b32.xlu1 %v3599_v24, %s3235_s25  ;;  %1367 = vrot.lane.b32.xlu0 %v949_v41, %s3235_s25  ;;  %713 = vst.msk [vmem:[#allocation2 + $0x121] sm:$0xff] %vm634_vm2, %v624_v25  ;;  %v1447_v36 = vld [vmem:[#allocation2 + $0xd8] sm:$0xff]  ;;  %v625_v37 = vmax.f32 %v567_v26, 0.0  ;;  %v3160_v41 = vld [vmem:[%s4213_s3 + $0x10] sm:$0xff]  }
 0x11e   : > { %v1064_v38 = vld [vmem:[#allocation2 + $0xf8] sm:$0xff]  ;;  %711 = vst.msk [vmem:[#allocation2 + $0x109] sm:$0xff] %vm634_vm2, %v622_v32  ;;  %v623_v42 = vmax.f32 %v559_v35, 0.0  ;;  %2903 = vmatprep.subr.bf16.mxu1 %v3160_v41  ;;  %v922_v20 = vld [vmem:[#allocation2 + $0x4a] sm:$0xff] }
 0x11f   : > { %v3611_v45 = vpack.c.bf16 %v1064_v38, %v1063_v31  ;;  %v1448_v49 = vld [vmem:[#allocation2 + $0xe0] sm:$0xff]  ;;  %714 = vst.msk [vmem:[#allocation2 + $0x129] sm:$0xff] %vm634_vm2, %v625_v37  ;;  %2904 = vmatpush3.bf16.msra.mxu1 %v3160_v41  ;;  %v951_v25 = vpack.c.bf16 %v923_v23, %v922_v20  ;;  %v1184_v26 = vld [vmem:[#allocation2 + $0x91] sm:$0xff] }
 0x120   : > { %v3614_v51 = vpack.c.bf16 %v1448_v49, %v1447_v36  ;;  %712 = vst.msk [vmem:[#allocation2 + $0x111] sm:$0xff] %vm634_vm2, %v623_v42  ;;  %2905 = vmatprep.subr.bf16.mxu1 %v3161_v52  ;;  %v1313_v37 = vld [vmem:[#allocation2 + $0x92] sm:$0xff]  ;;  %v1314_v38 = vld [vmem:[#allocation2 + $0x9a] sm:$0xff] }
 0x121   : > { %859 = vrot.lane.b32.xlu1 %v1209_v0, %s3229_s29  ;;  %1501 = vrot.lane.b32.xlu0 %v3540_v7, %s3230_s14  ;;  %781 = vst.msk [vmem:[#allocation3 + $0x50] sm:$0xff] %vm634_vm2, %v3611_v45  ;;  %v2893_v7 = vpop.f32.mrb[24].mxu1  ;;  %v1340_v49 = vpack.c.bf16 %v1314_v38, %v1313_v37  ;;  %v1569_v41 = vld [vmem:[#allocation2 + $0x81] sm:$0xff]  ;;  %v1573_v23 = vld [vmem:[#allocation2 + $0xb1] sm:$0xff] }
 0x122   : > { %780 = vst.msk [vmem:[#allocation3 + $0x48] sm:$0xff] %vm634_vm2, %v3614_v51  ;;  %v571_v58 = vpop.f32.mrb[25].mxu1  ;;  %v580_v61 = vadd.f32 %v2893_v7, %v3504_v62 }
 0x123   : > { %v572_v63 = vadd.f32 %v3504_v62, %v571_v58  ;;  %2906 = vmatpush3.bf16.msra.mxu1 %v3161_v52  ;;  %v2894_v2 = vpop.f32.mrb[26].mxu1 }
 0x124   : > { %v1067_v55 = vld [vmem:[#allocation2 + $0x120] sm:$0xff]  ;;  %v583_v4 = vadd.f32 %v2894_v2, %v3504_v62  ;;  %v574_v8 = vpop.f32.mrb[27].mxu1  ;;  %v628_v12 = vmax.f32 %v580_v61, 0.0  ;;  %3106 = vmatprep.subr.msk.bf16.mxu1 %vm1928_vm6, %v3162_v3 }
 0x125   : > { %1499 = vrot.lane.b32.xlu1 %v3543_v11, %s3230_s14  ;;  %1630 = vrot.lane.b32.xlu0 %v1209_v0, %s3232_s22  ;;  %v1451_v56 = vld [vmem:[#allocation2 + $0x108] sm:$0xff]  ;;  %v626_v13 = vmax.f32 %v572_v63, 0.0  ;;  %v575_v48 = vadd.f32 %v3504_v62, %v574_v8  ;;  %v926_v2 = vld [vmem:[#allocation2 + $0x7a] sm:$0xff] }
 0x126   : > { %v1068_v57 = vld [vmem:[#allocation2 + $0x128] sm:$0xff]  ;;  %v629_v18 = vmax.f32 %v583_v4, 0.0  ;;  %717 = vst.msk [vmem:[#allocation2 + $0x151] sm:$0xff] %vm634_vm2, %v628_v12 }
 0x127   : > { %v3633_v60 = vpack.c.bf16 %v1068_v57, %v1067_v55  ;;  %v1452_v1 = vld [vmem:[#allocation2 + $0x110] sm:$0xff]  ;;  %715 = vst.msk [vmem:[#allocation2 + $0x139] sm:$0xff] %vm634_vm2, %v626_v13  ;;  %v627_v19 = vmax.f32 %v575_v48, 0.0  ;;  %2908 = vmatpush3.bf16.msra.mxu1 %v1930_v17  ;;  %v927_v3 = vld [vmem:[#allocation2 + $0x82] sm:$0xff] }
 0x128   : > { %v3640_v0 = vpack.c.bf16 %v1452_v1, %v1451_v56  ;;  %718 = vst.msk [vmem:[#allocation2 + $0x159] sm:$0xff] %vm634_vm2, %v629_v18  ;;  %v2897_v52 = vpop.f32.mrb[28].mxu1  ;;  %v953_v4 = vpack.c.bf16 %v927_v3, %v926_v2  ;;  %v1189_v8 = vld [vmem:[#allocation2 + $0xc9] sm:$0xff] }
 0x129   : > { %1628 = vrot.lane.b32.xlu1 %v1595_v59, %s3232_s22  ;;  %1759 = vrot.lane.b32.xlu0 %v3599_v24, %s3234_s24  ;;  %783 = vst.msk [vmem:[#allocation3 + $0x60] sm:$0xff] %vm634_vm2, %v3633_v60  ;;  %716 = vst.msk [vmem:[#allocation2 + $0x141] sm:$0xff] %vm634_vm2, %v627_v19  ;;  %v587_v53 = vpop.f32.mrb[29].mxu1  ;;  %v596_v55 = vadd.f32 %v2897_v52, %v3504_v62  ;;  %v1317_v17 = vld [vmem:[#allocation2 + $0xc2] sm:$0xff]  ;;  %v1318_v18 = vld [vmem:[#allocation2 + $0xca] sm:$0xff] }
 0x12a   : > { %782 = vst.msk [vmem:[#allocation3 + $0x58] sm:$0xff] %vm634_vm2, %v3640_v0  ;;  %v588_v7 = vadd.f32 %v3504_v62, %v587_v53  ;;  %v2898_v56 = vpop.f32.mrb[30].mxu1  ;;  %v1342_v20 = vpack.c.bf16 %v1318_v18, %v1317_v17  ;;  %v935_v2 = vld [vmem:[#allocation2 + $0xe2] sm:$0xff] }
 0x12b   : > { %v599_v57 = vadd.f32 %v2898_v56, %v3504_v62  ;;  %v590_v58 = vpop.f32.mrb[31].mxu1 }
 0x12c   : > { %v591_v61 = vadd.f32 %v3504_v62, %v590_v58  ;;  %v1188_v62 = vld [vmem:[#allocation2 + $0xc1] sm:$0xff] }
 0x12d   : > { %857 = vrot.lane.b32.xlu1 %v1595_v59, %s3229_s29  ;;  %988 = vrot.lane.b32.xlu0 %v3599_v24, %s3228_s28  ;;  %v1071_v30 = vld [vmem:[#allocation2 + $0x150] sm:$0xff]  ;;  %v1211_v24 = vpack.c.bf16 %v1185_v29, %v1184_v26  ;;  %v633_v63 = vmax.f32 %v599_v57, 0.0  ;;  %v1213_v12 = vpack.c.bf16 %v1189_v8, %v1188_v62  ;;  %v1576_v57 = vld [vmem:[#allocation2 + $0xd9] sm:$0xff]  ;;  %v1577_v58 = vld [vmem:[#allocation2 + $0xe1] sm:$0xff] }
 0x12e   : > { %v1455_v35 = vld [vmem:[#allocation2 + $0x138] sm:$0xff]  ;;  %v631_v1 = vmax.f32 %v591_v61, 0.0  ;;  %v930_v26 = vld [vmem:[#allocation2 + $0xaa] sm:$0xff]  ;;  %v1196_v8 = vld [vmem:[#allocation2 + $0x121] sm:$0xff] }
 0x12f   : > { %v1072_v31 = vld [vmem:[#allocation2 + $0x158] sm:$0xff]  ;;  %722 = vst.msk [vmem:[#allocation2 + $0x189] sm:$0xff] %vm634_vm2, %v633_v63 }
 0x130   : > { %v3662_v32 = vpack.c.bf16 %v1072_v31, %v1071_v30  ;;  %v1456_v36 = vld [vmem:[#allocation2 + $0x140] sm:$0xff]  ;;  %720 = vst.msk [vmem:[#allocation2 + $0x171] sm:$0xff] %vm634_vm2, %v631_v1  ;;  %v931_v29 = vld [vmem:[#allocation2 + $0xb2] sm:$0xff]  ;;  %v3720_v30 = vpop.permute.xlu1 %1527 }
 0x131   : > { %986 = vrot.lane.b32.xlu1 %v951_v25, %s3228_s28  ;;  %1757 = vrot.lane.b32.xlu0 %v951_v25, %s3234_s24  ;;  %v3670_v42 = vpack.c.bf16 %v1456_v36, %v1455_v35  ;;  %v1192_v31 = vld [vmem:[#allocation2 + $0xf1] sm:$0xff]  ;;  %v934_v1 = vld [vmem:[#allocation2 + $0xda] sm:$0xff] }
 0x132   : > { %785 = vst.msk [vmem:[#allocation3 + $0x70] sm:$0xff] %vm634_vm2, %v3662_v32  ;;  %v957_v62 = vpack.c.bf16 %v935_v2, %v934_v1  ;;  %v1330_v1 = vld [vmem:[#allocation2 + $0x15a] sm:$0xff] }
 0x133   : > { %784 = vst.msk [vmem:[#allocation3 + $0x68] sm:$0xff] %vm634_vm2, %v3670_v42 }
 0x135   : > { %1119 = vrot.lane.b32.xlu1 %v3560_v44, %s3231_s21  ;;  %1113 = vrot.lane.b32.xlu0 %v3543_v11, %s3231_s21  ;;  %v1568_v11 = vld [vmem:[#allocation2 + $0x79] sm:$0xff] }
 0x136   : > { %v1597_v54 = vpack.c.bf16 %v1569_v41, %v1568_v11  ;;  %v1321_v11 = vld [vmem:[#allocation2 + $0xf2] sm:$0xff]  ;;  %v1322_v41 = vld [vmem:[#allocation2 + $0xfa] sm:$0xff] }
 0x139   : > { %1248 = vrot.lane.b32.xlu1 %v1211_v24, %s3233_s23  ;;  %1242 = vrot.lane.b32.xlu0 %v1595_v59, %s3233_s23  ;;  %v630_v59 = vmax.f32 %v588_v7, 0.0 }
 0x13b   : > { %719 = vst.msk [vmem:[#allocation2 + $0x169] sm:$0xff] %vm634_vm2, %v630_v59  ;;  %v1601_v59 = vpack.c.bf16 %v1577_v58, %v1576_v57  ;;  %v1201_v57 = vld [vmem:[#allocation2 + $0x159] sm:$0xff] }
 0x13d   : > { %1377 = vrot.lane.b32.xlu1 %v1340_v49, %s3235_s25  ;;  %1371 = vrot.lane.b32.xlu0 %v951_v25, %s3235_s25 }
 0x141   : > { %863 = vrot.lane.b32.xlu1 %v1211_v24, %s3229_s29  ;;  %1505 = vrot.lane.b32.xlu0 %v3560_v44, %s3230_s14  ;;  %v632_v44 = vmax.f32 %v596_v55, 0.0 }
 0x142   : > { %v1459_v13 = vld [vmem:[#allocation2 + $0x168] sm:$0xff]  ;;  %v1460_v48 = vld [vmem:[#allocation2 + $0x170] sm:$0xff] }
 0x143   : > { %721 = vst.msk [vmem:[#allocation2 + $0x181] sm:$0xff] %vm634_vm2, %v632_v44  ;;  %v3702_v19 = vpack.c.bf16 %v1460_v48, %v1459_v13 }
 0x145   : > { %1503 = vrot.lane.b32.xlu1 %v3563_v47, %s3230_s14  ;;  %1634 = vrot.lane.b32.xlu0 %v1211_v24, %s3232_s22  ;;  %786 = vst.msk [vmem:[#allocation3 + $0x78] sm:$0xff] %vm634_vm2, %v3702_v19  ;;  %v1193_v24 = vld [vmem:[#allocation2 + $0xf9] sm:$0xff] }
 0x146   : > { %v1215_v37 = vpack.c.bf16 %v1193_v24, %v1192_v31 }
 0x149   : > { %1632 = vrot.lane.b32.xlu1 %v1597_v54, %s3232_s22  ;;  %1763 = vrot.lane.b32.xlu0 %v1340_v49, %s3234_s24 }
 0x14d   : > { %861 = vrot.lane.b32.xlu1 %v1597_v54, %s3229_s29  ;;  %992 = vrot.lane.b32.xlu0 %v1340_v49, %s3228_s28 }
 0x151   : > { %990 = vrot.lane.b32.xlu1 %v953_v4, %s3228_s28  ;;  %1761 = vrot.lane.b32.xlu0 %v953_v4, %s3234_s24 }
 0x155   : > { %1123 = vrot.lane.b32.xlu1 %v3582_v6, %s3231_s21  ;;  %1117 = vrot.lane.b32.xlu0 %v3563_v47, %s3231_s21  ;;  %v1572_v47 = vld [vmem:[#allocation2 + $0xa9] sm:$0xff] }
 0x156   : > { %v1599_v25 = vpack.c.bf16 %v1573_v23, %v1572_v47  ;;  %v1325_v47 = vld [vmem:[#allocation2 + $0x122] sm:$0xff]  ;;  %v1326_v23 = vld [vmem:[#allocation2 + $0x12a] sm:$0xff] }
 0x159   : > { %1252 = vrot.lane.b32.xlu1 %v1213_v12, %s3233_s23  ;;  %1246 = vrot.lane.b32.xlu0 %v1597_v54, %s3233_s23  ;;  %v1344_v54 = vpack.c.bf16 %v1322_v41, %v1321_v11 }
 0x15d   : > { %1381 = vrot.lane.b32.xlu1 %v1342_v20, %s3235_s25  ;;  %1375 = vrot.lane.b32.xlu0 %v953_v4, %s3235_s25 }
 0x161   : > { %867 = vrot.lane.b32.xlu1 %v1213_v12, %s3229_s29  ;;  %1509 = vrot.lane.b32.xlu0 %v3582_v6, %s3230_s14  ;;  %v955_v6 = vpack.c.bf16 %v931_v29, %v930_v26 }
 0x165   : > { %1507 = vrot.lane.b32.xlu1 %v3585_v14, %s3230_s14  ;;  %1638 = vrot.lane.b32.xlu0 %v1213_v12, %s3232_s22  ;;  %v1197_v12 = vld [vmem:[#allocation2 + $0x129] sm:$0xff] }
 0x166   : > { %v1217_v17 = vpack.c.bf16 %v1197_v12, %v1196_v8 }
 0x169   : > { %1636 = vrot.lane.b32.xlu1 %v1599_v25, %s3232_s22  ;;  %1767 = vrot.lane.b32.xlu0 %v1342_v20, %s3234_s24 }
 0x16d   : > { %865 = vrot.lane.b32.xlu1 %v1599_v25, %s3229_s29  ;;  %996 = vrot.lane.b32.xlu0 %v1342_v20, %s3228_s28 }
 0x171   : > { %994 = vrot.lane.b32.xlu1 %v955_v6, %s3228_s28  ;;  %1765 = vrot.lane.b32.xlu0 %v955_v6, %s3234_s24 }
 0x173   : > { %v1498_v35 = vpop.permute.xlu0 %1497  ;;  %v1112_v36 = vpop.permute.xlu1 %1111 }
 0x175   : > { %1127 = vrot.lane.b32.xlu1 %v3611_v45, %s3231_s21  ;;  %1121 = vrot.lane.b32.xlu0 %v3585_v14, %s3231_s21 }
 0x177   : > { %v1627_v38 = vpop.permute.xlu0 %1626  ;;  %v1241_v49 = vpop.permute.xlu1 %1240 }
 0x179   : > { %1256 = vrot.lane.b32.xlu1 %v1215_v37, %s3233_s23  ;;  %1250 = vrot.lane.b32.xlu0 %v1599_v25, %s3233_s23 }
 0x17b   : > { %v1756_v52 = vpop.permute.xlu0 %1755  ;;  %v1370_v53 = vpop.permute.xlu1 %1369 }
 0x17d   : > { %1385 = vrot.lane.b32.xlu1 %v1344_v54, %s3235_s25  ;;  %1379 = vrot.lane.b32.xlu0 %v955_v6, %s3235_s25  ;;  %v1346_v6 = vpack.c.bf16 %v1326_v23, %v1325_v47 }
 0x17f   : > { %v985_v55 = vpop.permute.xlu0 %984  ;;  %v856_v7 = vpop.permute.xlu1 %855 }
 0x180   : > { %902 = vst.msk [vmem:[#allocation3 + $0x10] sm:$0xff] %vm899_vm4, %v856_v7 }
 0x181   : > { %871 = vrot.lane.b32.xlu1 %v1215_v37, %s3229_s29  ;;  %1513 = vrot.lane.b32.xlu0 %v3611_v45, %s3230_s14  ;;  %1031 = vst.msk [vmem:[#allocation3 + $0x10] sm:$0xff] %vm1028_vm5, %v985_v55 }
 0x183   : > { %v983_v14 = vpop.permute.xlu1 %982  ;;  %v854_v56 = vpop.permute.xlu0 %853 }
 0x184   : > { %901 = vst.msk [vmem:[#allocation3 + $0x8] sm:$0xff] %vm899_vm4, %v854_v56  ;;  %v1200_v56 = vld [vmem:[#allocation2 + $0x151] sm:$0xff] }
 0x185   : > { %1030 = vst.msk [vmem:[#allocation3 + $0x8] sm:$0xff] %vm1028_vm5, %v983_v14  ;;  %1511 = vrot.lane.b32.xlu1 %v3614_v51, %s3230_s14  ;;  %1642 = vrot.lane.b32.xlu0 %v1215_v37, %s3232_s22  ;;  %v1581_v37 = vld [vmem:[#allocation2 + $0x111] sm:$0xff] }
 0x186   : > { %1159 = vst.msk [vmem:[#allocation3 + $0x8] sm:$0xff] %vm1157_vm7, %v1112_v36  ;;  %v1580_v36 = vld [vmem:[#allocation2 + $0x109] sm:$0xff] }
 0x187   : > { %v3743_v45 = vpop.permute.xlu1 %1115  ;;  %v1110_v44 = vpop.permute.xlu0 %1109  ;;  %1288 = vst.msk [vmem:[#allocation3 + $0x8] sm:$0xff] %vm1286_vm8, %v1241_v49  ;;  %v1603_v49 = vpack.c.bf16 %v1581_v37, %v1580_v36  ;;  %v1204_v37 = vld [vmem:[#allocation2 + $0x181] sm:$0xff] }
 0x188   : > { %1158 = vst.msk [vmem:[#allocation3] sm:$0xff] %vm1157_vm7, %v1110_v44  ;;  %v1219_v44 = vpack.c.bf16 %v1201_v57, %v1200_v56 }
 0x189   : > { %1417 = vst.msk [vmem:[#allocation3 + $0x8] sm:$0xff] %vm1415_vm9, %v1370_v53  ;;  %1640 = vrot.lane.b32.xlu1 %v1601_v59, %s3232_s22  ;;  %1771 = vrot.lane.b32.xlu0 %v1344_v54, %s3234_s24  ;;  %v938_v53 = vld [vmem:[#allocation2 + $0x10a] sm:$0xff] }
 0x18b   : > { %v1245_v61 = vpop.permute.xlu1 %1244  ;;  %v1239_v63 = vpop.permute.xlu0 %1238 }
 0x18c   : > { %1287 = vst.msk [vmem:[#allocation3] sm:$0xff] %vm1286_vm8, %v1239_v63  ;;  %v1329_v63 = vld [vmem:[#allocation2 + $0x152] sm:$0xff] }
 0x18d   : > { %869 = vrot.lane.b32.xlu1 %v1601_v59, %s3229_s29  ;;  %1000 = vrot.lane.b32.xlu0 %v1344_v54, %s3228_s28  ;;  %v939_v54 = vld [vmem:[#allocation2 + $0x112] sm:$0xff] }
 0x18e   : > { %v959_v14 = vpack.c.bf16 %v939_v54, %v938_v53  ;;  %v1333_v53 = vld [vmem:[#allocation2 + $0x182] sm:$0xff]  ;;  %v1334_v54 = vld [vmem:[#allocation2 + $0x18a] sm:$0xff] }
 0x18f   : > { %v1374_v3 = vpop.permute.xlu1 %1373  ;;  %v1368_v4 = vpop.permute.xlu0 %1367  ;;  %v1350_v56 = vpack.c.bf16 %v1334_v54, %v1333_v53 }
 0x190   : > { %1416 = vst.msk [vmem:[#allocation3] sm:$0xff] %vm1415_vm9, %v1368_v4 }
 0x191   : > { %1546 = vst.msk [vmem:[#allocation3] sm:$0xff] %vm1545_vm10, %v1498_v35  ;;  %998 = vrot.lane.b32.xlu1 %v957_v62, %s3228_s28  ;;  %1769 = vrot.lane.b32.xlu0 %v957_v62, %s3234_s24 }
 0x192   : > { %1675 = vst.msk [vmem:[#allocation3] sm:$0xff] %vm1674_vm11, %v1627_v38 }
 0x193   : > { %1804 = vst.msk [vmem:[#allocation3] sm:$0xff] %vm1803_vm12, %v1756_v52  ;;  %v860_v13 = vpop.permute.xlu1 %859  ;;  %v1502_v48 = vpop.permute.xlu0 %1501 }
 0x194   : > { %904 = vst.msk [vmem:[#allocation3 + $0x20] sm:$0xff] %vm899_vm4, %v860_v13 }
 0x195   : > { %1131 = vrot.lane.b32.xlu1 %v3633_v60, %s3231_s21  ;;  %1125 = vrot.lane.b32.xlu0 %v3614_v51, %s3231_s21 }
 0x197   : > { %v1500_v18 = vpop.permute.xlu1 %1499  ;;  %v1631_v20 = vpop.permute.xlu0 %1630 }
 0x198   : > { %1547 = vst.msk [vmem:[#allocation3 + $0x8] sm:$0xff] %vm1545_vm10, %v1500_v18 }
 0x199   : > { %1260 = vrot.lane.b32.xlu1 %v1217_v17, %s3233_s23  ;;  %1254 = vrot.lane.b32.xlu0 %v1601_v59, %s3233_s23 }
 0x19a   : > { %v1820_v25 = vld [vmem:[#allocation3] sm:$0xff] }
 0x19b   : > { %v1629_v26 = vpop.permute.xlu1 %1628  ;;  %2909 = vmatprep.mubr.msk.bf16.mxu1 %vm1879_vm13, %v1820_v25  ;;  %v1760_v29 = vpop.permute.xlu0 %1759 }
 0x19c   : > { %1676 = vst.msk [vmem:[#allocation3 + $0x8] sm:$0xff] %vm1674_vm11, %v1629_v26  ;;  %v942_v26 = vld [vmem:[#allocation2 + $0x13a] sm:$0xff] }
 0x19d   : > { %1389 = vrot.lane.b32.xlu1 %v1346_v6, %s3235_s25  ;;  %1383 = vrot.lane.b32.xlu0 %v957_v62, %s3235_s25  ;;  %v1348_v62 = vpack.c.bf16 %v1330_v1, %v1329_v63  ;;  %v1717_v63 = vld [vmem:[#allocation2 + $0x16a] sm:$0xff]  ;;  %v1718_v1 = vld [vmem:[#allocation2 + $0x172] sm:$0xff] }
 0x19f   : > { %v858_v51 = vpop.permute.xlu1 %857  ;;  %v989_v31 = vpop.permute.xlu0 %988 }
 0x1a0   : > { %903 = vst.msk [vmem:[#allocation3 + $0x18] sm:$0xff] %vm899_vm4, %v858_v51  ;;  %v1076_v51 = vld [vmem:[#allocation2 + $0x188] sm:$0xff] }
 0x1a1   : > { %1033 = vst.msk [vmem:[#allocation3 + $0x20] sm:$0xff] %vm1028_vm5, %v989_v31  ;;  %875 = vrot.lane.b32.xlu1 %v1217_v17, %s3229_s29  ;;  %1517 = vrot.lane.b32.xlu0 %v3633_v60, %s3230_s14 }
 0x1a3   : > { %v987_v24 = vpop.permute.xlu1 %986  ;;  %v1758_v35 = vpop.permute.xlu0 %1757 }
 0x1a4   : > { %1032 = vst.msk [vmem:[#allocation3 + $0x18] sm:$0xff] %vm1028_vm5, %v987_v24 }
 0x1a5   : > { %1805 = vst.msk [vmem:[#allocation3 + $0x8] sm:$0xff] %vm1803_vm12, %v1758_v35  ;;  %1515 = vrot.lane.b32.xlu1 %v3640_v0, %s3230_s14  ;;  %1646 = vrot.lane.b32.xlu0 %v1217_v17, %s3232_s22  ;;  %v1585_v17 = vld [vmem:[#allocation2 + $0x141] sm:$0xff] }
 0x1a6   : > { %1161 = vst.msk [vmem:[#allocation3 + $0x18] sm:$0xff] %vm1157_vm7, %v3743_v45 }
 0x1a7   : > { %1290 = vst.msk [vmem:[#allocation3 + $0x18] sm:$0xff] %vm1286_vm8, %v1245_v61  ;;  %v1120_v60 = vpop.permute.xlu1 %1119  ;;  %v1114_v38 = vpop.permute.xlu0 %1113 }
 0x1a8   : > { %1419 = vst.msk [vmem:[#allocation3 + $0x18] sm:$0xff] %vm1415_vm9, %v1374_v3 }
 0x1a9   : > { %1160 = vst.msk [vmem:[#allocation3 + $0x10] sm:$0xff] %vm1157_vm7, %v1114_v38  ;;  %1644 = vrot.lane.b32.xlu1 %v1603_v49, %s3232_s22  ;;  %1775 = vrot.lane.b32.xlu0 %v1346_v6, %s3234_s24 }
 0x1ab   : > { %v1249_v11 = vpop.permute.xlu1 %1248  ;;  %v1243_v41 = vpop.permute.xlu0 %1242 }
 0x1ac   : > { %v1821_v52 = vld [vmem:[#allocation3 + $0x8] sm:$0xff]  ;;  %1289 = vst.msk [vmem:[#allocation3 + $0x10] sm:$0xff] %vm1286_vm8, %v1243_v41 }
 0x1ad   : > { %2910 = vmatmul.mubr.msk.bf16.vlgmr.msra.gmra.mrb[32].mxu1 %vm1879_vm13, %v1821_v52  ;;  %873 = vrot.lane.b32.xlu1 %v1603_v49, %s3229_s29 }
 0x1ae   : > { %1004 = vrot.lane.b32.xlu0 %v1346_v6, %s3228_s28  ;;  %v1075_v6 = vld [vmem:[#allocation2 + $0x180] sm:$0xff] }
 0x1af   : > { %v1378_v55 = vpop.permute.xlu1 %1377  ;;  %v1372_v7 = vpop.permute.xlu0 %1371  ;;  %v1092_v36 = vpack.c.bf16 %v1076_v51, %v1075_v6 }
 0x1b0   : > { %1418 = vst.msk [vmem:[#allocation3 + $0x10] sm:$0xff] %vm1415_vm9, %v1372_v7 }
 0x1b1   : > { %1548 = vst.msk [vmem:[#allocation3 + $0x10] sm:$0xff] %vm1545_vm10, %v1502_v48  ;;  %1002 = vrot.lane.b32.xlu1 %v959_v14, %s3228_s28  ;;  %v1584_v48 = vld [vmem:[#allocation2 + $0x139] sm:$0xff] }
 0x1b2   : > { %1773 = vrot.lane.b32.xlu0 %v959_v14, %s3234_s24  ;;  %1677 = vst.msk [vmem:[#allocation3 + $0x10] sm:$0xff] %vm1674_vm11, %v1631_v20  ;;  %v1605_v20 = vpack.c.bf16 %v1585_v17, %v1584_v48  ;;  %v1721_v17 = vld [vmem:[#allocation2 + $0x19a] sm:$0xff] }
 0x1b3   : > { %1806 = vst.msk [vmem:[#allocation3 + $0x10] sm:$0xff] %vm1803_vm12, %v1760_v29  ;;  %v864_v58 = vpop.permute.xlu1 %863  ;;  %v1506_v45 = vpop.permute.xlu0 %1505  ;;  %v943_v29 = vld [vmem:[#allocation2 + $0x142] sm:$0xff] }
 0x1b4   : > { %906 = vst.msk [vmem:[#allocation3 + $0x30] sm:$0xff] %vm899_vm4, %v864_v58  ;;  %v961_v35 = vpack.c.bf16 %v943_v29, %v942_v26  ;;  %v1588_v58 = vld [vmem:[#allocation2 + $0x169] sm:$0xff] }
 0x1b5   : > { %1135 = vrot.lane.b32.xlu1 %v3662_v32, %s3231_s21 }
 0x1b6   : > { %1129 = vrot.lane.b32.xlu0 %v3640_v0, %s3231_s21 }
 0x1b7   : > { %v1504_v59 = vpop.permute.xlu1 %1503  ;;  %v1635_v61 = vpop.permute.xlu0 %1634 }
 0x1b8   : > { %1549 = vst.msk [vmem:[#allocation3 + $0x18] sm:$0xff] %vm1545_vm10, %v1504_v59 }
 0x1b9   : > { %1264 = vrot.lane.b32.xlu1 %v1219_v44, %s3233_s23 }
 0x1ba   : > { %1258 = vrot.lane.b32.xlu0 %v1603_v49, %s3233_s23  ;;  %v1822_v2 = vld [vmem:[#allocation3 + $0x10] sm:$0xff] }
 0x1bb   : > { %v1633_v3 = vpop.permute.xlu1 %1632  ;;  %v1764_v4 = vpop.permute.xlu0 %1763  ;;  %2913 = vmatprep.mubr.msk.bf16.mxu1 %vm1879_vm13, %v1822_v2 }
 0x1bc   : > { %1678 = vst.msk [vmem:[#allocation3 + $0x18] sm:$0xff] %vm1674_vm11, %v1633_v3 }
 0x1bd   : > { %1393 = vrot.lane.b32.xlu1 %v1348_v62, %s3235_s25 }
 0x1be   : > { %1387 = vrot.lane.b32.xlu0 %v959_v14, %s3235_s25 }
 0x1bf   : > { %v862_v0 = vpop.permute.xlu1 %861  ;;  %v993_v8 = vpop.permute.xlu0 %992 }
 0x1c0   : > { %905 = vst.msk [vmem:[#allocation3 + $0x28] sm:$0xff] %vm899_vm4, %v862_v0  ;;  %v1593_v0 = vld [vmem:[#allocation2 + $0x1a1] sm:$0xff] }
 0x1c1   : > { %1035 = vst.msk [vmem:[#allocation3 + $0x30] sm:$0xff] %vm1028_vm5, %v993_v8  ;;  %879 = vrot.lane.b32.xlu1 %v1219_v44, %s3229_s29 }
 0x1c2   : > { %1521 = vrot.lane.b32.xlu0 %v3662_v32, %s3230_s14 }
 0x1c3   : > { %v991_v12 = vpop.permute.xlu1 %990  ;;  %v1762_v13 = vpop.permute.xlu0 %1761 }
 0x1c4   : > { %1034 = vst.msk [vmem:[#allocation3 + $0x28] sm:$0xff] %vm1028_vm5, %v991_v12 }
 0x1c5   : > { %1807 = vst.msk [vmem:[#allocation3 + $0x18] sm:$0xff] %vm1803_vm12, %v1762_v13  ;;  %1519 = vrot.lane.b32.xlu1 %v3670_v42, %s3230_s14 }
 0x1c6   : > { %1163 = vst.msk [vmem:[#allocation3 + $0x28] sm:$0xff] %vm1157_vm7, %v1120_v60  ;;  %1650 = vrot.lane.b32.xlu0 %v1219_v44, %s3232_s22  ;;  %v1205_v60 = vld [vmem:[#allocation2 + $0x189] sm:$0xff] }
 0x1c7   : > { %1292 = vst.msk [vmem:[#allocation3 + $0x28] sm:$0xff] %vm1286_vm8, %v1249_v11  ;;  %v3823_v32 = vpop.permute.xlu1 %1123  ;;  %v1118_v18 = vpop.permute.xlu0 %1117  ;;  %v1221_v11 = vpack.c.bf16 %v1205_v60, %v1204_v37  ;;  %v2141_v37 = vld [vmem:[%s4215_s5] sm:$0xf] }
 0x1c8   : > { %1421 = vst.msk [vmem:[#allocation3 + $0x28] sm:$0xff] %vm1415_vm9, %v1378_v55  ;;  %3107 = vmatprep.subr.msk.bf16.mxu0 %vm1928_vm6, %v2141_v37 }
 0x1c9   : > { %1162 = vst.msk [vmem:[#allocation3 + $0x20] sm:$0xff] %vm1157_vm7, %v1118_v18  ;;  %1648 = vrot.lane.b32.xlu1 %v1605_v20, %s3232_s22 }
 0x1ca   : > { %1779 = vrot.lane.b32.xlu0 %v1348_v62, %s3234_s24 }
 0x1cb   : > { %v1253_v47 = vpop.permute.xlu1 %1252  ;;  %v1247_v23 = vpop.permute.xlu0 %1246 }
 0x1cc   : > { %v1823_v25 = vld [vmem:[#allocation3 + $0x18] sm:$0xff]  ;;  %1291 = vst.msk [vmem:[#allocation3 + $0x20] sm:$0xff] %vm1286_vm8, %v1247_v23 }
 0x1cd   : > { %2914 = vmatmul.mubr.msk.bf16.gmra.mrb[36].mxu1 %vm1879_vm13, %v1823_v25  ;;  %877 = vrot.lane.b32.xlu1 %v1605_v20, %s3229_s29 }
 0x1ce   : > { %1008 = vrot.lane.b32.xlu0 %v1348_v62, %s3228_s28  ;;  %v1592_v62 = vld [vmem:[#allocation2 + $0x199] sm:$0xff] }
 0x1cf   : > { %v1382_v31 = vpop.permute.xlu1 %1381  ;;  %v1376_v24 = vpop.permute.xlu0 %1375  ;;  %v1609_v48 = vpack.c.bf16 %v1593_v0, %v1592_v62 }
 0x1d0   : > { %1420 = vst.msk [vmem:[#allocation3 + $0x20] sm:$0xff] %vm1415_vm9, %v1376_v24 }
 0x1d1   : > { %1550 = vst.msk [vmem:[#allocation3 + $0x20] sm:$0xff] %vm1545_vm10, %v1506_v45  ;;  %1006 = vrot.lane.b32.xlu1 %v961_v35, %s3228_s28  ;;  %v1589_v45 = vld [vmem:[#allocation2 + $0x171] sm:$0xff] }
 0x1d2   : > { %1777 = vrot.lane.b32.xlu0 %v961_v35, %s3234_s24  ;;  %1679 = vst.msk [vmem:[#allocation3 + $0x20] sm:$0xff] %vm1674_vm11, %v1635_v61  ;;  %v1607_v61 = vpack.c.bf16 %v1589_v45, %v1588_v58 }
 0x1d3   : > { %1808 = vst.msk [vmem:[#allocation3 + $0x20] sm:$0xff] %vm1803_vm12, %v1764_v4  ;;  %v868_v38 = vpop.permute.xlu1 %867  ;;  %v1510_v49 = vpop.permute.xlu0 %1509  ;;  %v1736_v4 = vpack.c.bf16 %v1718_v1, %v1717_v63 }
 0x1d4   : > { %908 = vst.msk [vmem:[#allocation3 + $0x40] sm:$0xff] %vm899_vm4, %v868_v38 }
 0x1d5   : > { %1139 = vrot.lane.b32.xlu1 %v1092_v36, %s3231_s21 }
 0x1d6   : > { %1133 = vrot.lane.b32.xlu0 %v3670_v42, %s3231_s21 }
 0x1d7   : > { %v1508_v41 = vpop.permute.xlu1 %1507  ;;  %v1639_v52 = vpop.permute.xlu0 %1638 }
 0x1d8   : > { %1551 = vst.msk [vmem:[#allocation3 + $0x28] sm:$0xff] %vm1545_vm10, %v1508_v41 }
 0x1d9   : > { %1268 = vrot.lane.b32.xlu1 %v1221_v11, %s3233_s23 }
 0x1da   : > { %1262 = vrot.lane.b32.xlu0 %v1605_v20, %s3233_s23  ;;  %v1824_v55 = vld [vmem:[#allocation3 + $0x20] sm:$0xff] }
 0x1db   : > { %v1637_v7 = vpop.permute.xlu1 %1636  ;;  %v1768_v14 = vpop.permute.xlu0 %1767  ;;  %2917 = vmatprep.mubr.msk.bf16.mxu1 %vm1879_vm13, %v1824_v55 }
 0x1dc   : > { %1680 = vst.msk [vmem:[#allocation3 + $0x28] sm:$0xff] %vm1674_vm11, %v1637_v7 }
 0x1dd   : > { %1397 = vrot.lane.b32.xlu1 %v1350_v56, %s3235_s25 }
 0x1de   : > { %1391 = vrot.lane.b32.xlu0 %v961_v35, %s3235_s25 }
 0x1df   : > { %v866_v42 = vpop.permute.xlu1 %865  ;;  %v997_v57 = vpop.permute.xlu0 %996 }
 0x1e0   : > { %907 = vst.msk [vmem:[#allocation3 + $0x38] sm:$0xff] %vm899_vm4, %v866_v42 }
 0x1e1   : > { %1037 = vst.msk [vmem:[#allocation3 + $0x40] sm:$0xff] %vm1028_vm5, %v997_v57  ;;  %1523 = vrot.lane.b32.xlu1 %v3702_v19, %s3230_s14 }
 0x1e2   : > { %1525 = vrot.lane.b32.xlu0 %v1092_v36, %s3230_s14 }
 0x1e3   : > { %v995_v44 = vpop.permute.xlu1 %994  ;;  %v1766_v59 = vpop.permute.xlu0 %1765 }
 0x1e4   : > { %1036 = vst.msk [vmem:[#allocation3 + $0x38] sm:$0xff] %vm1028_vm5, %v995_v44 }
 0x1e5   : > { %1809 = vst.msk [vmem:[#allocation3 + $0x28] sm:$0xff] %vm1803_vm12, %v1766_v59  ;;  %1652 = vrot.lane.b32.xlu1 %v1607_v61, %s3232_s22 }
 0x1e6   : > { %1165 = vst.msk [vmem:[#allocation3 + $0x38] sm:$0xff] %vm1157_vm7, %v3823_v32  ;;  %1654 = vrot.lane.b32.xlu0 %v1221_v11, %s3232_s22  ;;  %v1722_v32 = vld [vmem:[#allocation2 + $0x1a2] sm:$0xff] }
 0x1e7   : > { %1294 = vst.msk [vmem:[#allocation3 + $0x38] sm:$0xff] %vm1286_vm8, %v1253_v47  ;;  %v1128_v2 = vpop.permute.xlu1 %1127  ;;  %v1122_v3 = vpop.permute.xlu0 %1121  ;;  %v1738_v47 = vpack.c.bf16 %v1722_v32, %v1721_v17 }
 0x1e8   : > { %1423 = vst.msk [vmem:[#allocation3 + $0x38] sm:$0xff] %vm1415_vm9, %v1382_v31 }
 0x1e9   : > { %1164 = vst.msk [vmem:[#allocation3 + $0x30] sm:$0xff] %vm1157_vm7, %v1122_v3  ;;  %881 = vrot.lane.b32.xlu1 %v1607_v61, %s3229_s29 }
 0x1ea   : > { %1781 = vrot.lane.b32.xlu0 %v1736_v4, %s3234_s24 }
 0x1eb   : > { %v1257_v8 = vpop.permute.xlu1 %1256  ;;  %v1251_v12 = vpop.permute.xlu0 %1250 }
 0x1ec   : > { %v1825_v13 = vld [vmem:[#allocation3 + $0x28] sm:$0xff]  ;;  %1293 = vst.msk [vmem:[#allocation3 + $0x30] sm:$0xff] %vm1286_vm8, %v1251_v12 }
 0x1ed   : > { %2918 = vmatmul.mubr.msk.bf16.gmra.mrb[40].mxu1 %vm1879_vm13, %v1825_v13  ;;  %1010 = vrot.lane.b32.xlu1 %v1736_v4, %s3228_s28  ;;  %s2710_s28 = sshll.u32 %s323_s27, 8 }
 0x1ee   : > { %1137 = vrot.lane.b32.xlu0 %v3702_v19, %s3231_s21  ;;  %s4063_s14 = scalar_lea.vmem [#allocation4], %s2710_s28  ;;  %s2792_s21 = sshll.u32 %s3309_s13, 12 }
 0x1ef   : > { %v1386_v18 = vpop.permute.xlu1 %1385  ;;  %v1380_v20 = vpop.permute.xlu0 %1379  ;;  %s4168_s13 = scalar_lea.sflag [#allocation5], %s323_s27  ;;  %s3169_s28 = scalar_lea.vmem %s3168_s26, 8192 }
 0x1f0   : > { %1422 = vst.msk [vmem:[#allocation3 + $0x30] sm:$0xff] %vm1415_vm9, %v1380_v20 }
 0x1f1   : > { %1552 = vst.msk [vmem:[#allocation3 + $0x30] sm:$0xff] %vm1545_vm10, %v1510_v49  ;;  %1656 = vrot.lane.b32.xlu1 %v1609_v48, %s3232_s22  ;;  %v2198_v49 = vsel %vm1928_vm6, %v2141_v37, 0  ;;  %s2644_s22 = sshll.u32 %s4063_s14, 4  ;;  %s4160_s22 = int_to_ptr.vmem [resolvable:$true] %s2644_s22 }
 0x1f2   : > { %1266 = vrot.lane.b32.xlu0 %v1607_v61, %s3233_s23  ;;  %1681 = vst.msk [vmem:[#allocation3 + $0x30] sm:$0xff] %vm1674_vm11, %v1639_v52  ;;  %2942 = vmatpush3.bf16.msra.mxu0 %v2198_v49  ;;  %s3163_s16 = scalar_lea.vmem %s4160_s22, 4096  ;;  %p3170_p0 = scmp.lt.s32.totalorder %s4160_s22, %s3168_s26 }
 0x1f3   : > { %1810 = vst.msk [vmem:[#allocation3 + $0x30] sm:$0xff] %vm1803_vm12, %v1768_v14  ;;  %v872_v23 = vpop.permute.xlu1 %871  ;;  %v1514_v19 = vpop.permute.xlu0 %1513  ;;  %p3164_p11 = scmp.ne.s32.totalorder %s4160_s22, %s3163_s16  ;;  %p3171_p1 = scmp.lt.s32.totalorder %s3169_s28, %s3163_s16 }
 0x1f4   : > { %910 = vst.msk [vmem:[#allocation3 + $0x50] sm:$0xff] %vm899_vm4, %v872_v23 }
 0x1f5   : > { %1785 = vrot.lane.b32.xlu1 %v1738_v47, %s3234_s24  ;;  %p3165_p12 = pnand %p3164_p11, %p3326_p5  ;;  %p3172_p2 = por %p3171_p1, %p3170_p0 }
 0x1f6   : > { %1395 = vrot.lane.b32.xlu0 %v1736_v4, %s3235_s25  ;;  %s4156_s25 = scalar_lea.hbm %s4219_s9, %s2792_s21 }
 0x1f7   : > { %v1512_v25 = vpop.permute.xlu1 %1511  ;;  %v1643_v26 = vpop.permute.xlu0 %1642  ;;  %p3166_p13 = pneg %p3165_p12 }
 0x1f8   : > { %1553 = vst.msk [vmem:[#allocation3 + $0x38] sm:$0xff] %vm1545_vm10, %v1512_v25 }
 0x1f9   : > { %p3173_p3 = pnand %p3172_p2, %p3166_p13 }
 0x1fa   : > { %1783 = vrot.lane.b32.xlu0 %v1350_v56, %s3234_s24  ;;  %v1826_v29 = vld [vmem:[#allocation3 + $0x30] sm:$0xff] }
 0x1fb   : > { %v1641_v6 = vpop.permute.xlu1 %1640  ;;  %v1772_v51 = vpop.permute.xlu0 %1771  ;;  %2921 = vmatprep.mubr.msk.bf16.mxu1 %vm1879_vm13, %v1826_v29 }
 0x1fc   : > { %1682 = vst.msk [vmem:[#allocation3 + $0x38] sm:$0xff] %vm1674_vm11, %v1641_v6 }
 0x1ff   : > { %v870_v31 = vpop.permute.xlu1 %869  ;;  %v1001_v24 = vpop.permute.xlu0 %1000 }
 0x200   : > { %909 = vst.msk [vmem:[#allocation3 + $0x48] sm:$0xff] %vm899_vm4, %v870_v31 }
 0x201   : > { %1039 = vst.msk [vmem:[#allocation3 + $0x50] sm:$0xff] %vm1028_vm5, %v1001_v24 }
 0x203   : > { %v999_v35 = vpop.permute.xlu1 %998  ;;  %v1770_v36 = vpop.permute.xlu0 %1769 }
 0x204   : > { %1038 = vst.msk [vmem:[#allocation3 + $0x48] sm:$0xff] %vm1028_vm5, %v999_v35 }
 0x205   : > { %1811 = vst.msk [vmem:[#allocation3 + $0x38] sm:$0xff] %vm1803_vm12, %v1770_v36 }
 0x206   : > { %1167 = vst.msk [vmem:[#allocation3 + $0x48] sm:$0xff] %vm1157_vm7, %v1128_v2 }
 0x207   : > { %1296 = vst.msk [vmem:[#allocation3 + $0x48] sm:$0xff] %vm1286_vm8, %v1257_v8  ;;  %v1132_v60 = vpop.permute.xlu1 %1131  ;;  %v1126_v38 = vpop.permute.xlu0 %1125 }
 0x208   : > { %1425 = vst.msk [vmem:[#allocation3 + $0x48] sm:$0xff] %vm1415_vm9, %v1386_v18 }
 0x209   : > { %1166 = vst.msk [vmem:[#allocation3 + $0x40] sm:$0xff] %vm1157_vm7, %v1126_v38 }
 0x20b   : > { %v1261_v11 = vpop.permute.xlu1 %1260  ;;  %v1255_v41 = vpop.permute.xlu0 %1254 }
 0x20c   : > { %v1827_v52 = vld [vmem:[#allocation3 + $0x38] sm:$0xff]  ;;  %1295 = vst.msk [vmem:[#allocation3 + $0x40] sm:$0xff] %vm1286_vm8, %v1255_v41 }
 0x20d   : > { %2922 = vmatmul.mubr.msk.bf16.gmra.mrb[44].mxu1 %vm1879_vm13, %v1827_v52 }
 0x20f   : > { %v1390_v53 = vpop.permute.xlu1 %1389  ;;  %v1384_v54 = vpop.permute.xlu0 %1383 }
 0x210   : > { %1424 = vst.msk [vmem:[#allocation3 + $0x40] sm:$0xff] %vm1415_vm9, %v1384_v54 }
 0x211   : > { %1554 = vst.msk [vmem:[#allocation3 + $0x40] sm:$0xff] %vm1545_vm10, %v1514_v19 }
 0x212   : > { %1683 = vst.msk [vmem:[#allocation3 + $0x40] sm:$0xff] %vm1674_vm11, %v1643_v26 }
 0x213   : > { %1812 = vst.msk [vmem:[#allocation3 + $0x40] sm:$0xff] %vm1803_vm12, %v1772_v51  ;;  %v876_v55 = vpop.permute.xlu1 %875  ;;  %v1518_v7 = vpop.permute.xlu0 %1517 }
 0x214   : > { %912 = vst.msk [vmem:[#allocation3 + $0x60] sm:$0xff] %vm899_vm4, %v876_v55 }
 0x217   : > { %v1516_v14 = vpop.permute.xlu1 %1515  ;;  %v1647_v56 = vpop.permute.xlu0 %1646 }
 0x218   : > { %1555 = vst.msk [vmem:[#allocation3 + $0x48] sm:$0xff] %vm1545_vm10, %v1516_v14 }
 0x21a   : > { %v1828_v42 = vld [vmem:[#allocation3 + $0x40] sm:$0xff] }
 0x21b   : > { %v1645_v57 = vpop.permute.xlu1 %1644  ;;  %v1776_v58 = vpop.permute.xlu0 %1775  ;;  %2925 = vmatprep.mubr.msk.bf16.mxu1 %vm1879_vm13, %v1828_v42 }
 0x21c   : > { %1684 = vst.msk [vmem:[#allocation3 + $0x48] sm:$0xff] %vm1674_vm11, %v1645_v57  ;;  %v3963_v57 = vld [vmem:[%s4214_s4] ss:$0 sm:$0xff] }
 0x21f   : > { %v874_v45 = vpop.permute.xlu1 %873 }
 0x220   : > { %v1005_v44 = vpop.permute.xlu0 %1004  ;;  %911 = vst.msk [vmem:[#allocation3 + $0x58] sm:$0xff] %vm899_vm4, %v874_v45 }
 0x221   : > { %1041 = vst.msk [vmem:[#allocation3 + $0x60] sm:$0xff] %vm1028_vm5, %v1005_v44 }
 0x223   : > { %v1003_v59 = vpop.permute.xlu1 %1002 }
 0x224   : > { %v1774_v61 = vpop.permute.xlu0 %1773  ;;  %1040 = vst.msk [vmem:[#allocation3 + $0x58] sm:$0xff] %vm1028_vm5, %v1003_v59 }
 0x225   : > { %1813 = vst.msk [vmem:[#allocation3 + $0x48] sm:$0xff] %vm1803_vm12, %v1774_v61 }
 0x226   : > { %1169 = vst.msk [vmem:[#allocation3 + $0x58] sm:$0xff] %vm1157_vm7, %v1132_v60 }
 0x227   : > { %1298 = vst.msk [vmem:[#allocation3 + $0x58] sm:$0xff] %vm1286_vm8, %v1261_v11  ;;  %v1136_v63 = vpop.permute.xlu1 %1135 }
 0x228   : > { %1427 = vst.msk [vmem:[#allocation3 + $0x58] sm:$0xff] %vm1415_vm9, %v1390_v53  ;;  %v1130_v1 = vpop.permute.xlu0 %1129 }
 0x229   : > { %1168 = vst.msk [vmem:[#allocation3 + $0x50] sm:$0xff] %vm1157_vm7, %v1130_v1 }
 0x22b   : > { %v1265_v2 = vpop.permute.xlu1 %1264 }
 0x22c   : > { %v1259_v3 = vpop.permute.xlu0 %1258  ;;  %v1829_v4 = vld [vmem:[#allocation3 + $0x48] sm:$0xff] }
 0x22d   : > { %1297 = vst.msk [vmem:[#allocation3 + $0x50] sm:$0xff] %vm1286_vm8, %v1259_v3  ;;  %2926 = vmatmul.mubr.msk.bf16.gmra.mrb[48].mxu1 %vm1879_vm13, %v1829_v4 }
 0x22f   : > { %v1394_v62 = vpop.permute.xlu1 %1393 }
 0x230   : > { %v1388_v0 = vpop.permute.xlu0 %1387 }
 0x231   : > { %1426 = vst.msk [vmem:[#allocation3 + $0x50] sm:$0xff] %vm1415_vm9, %v1388_v0 }
 0x232   : > { %1556 = vst.msk [vmem:[#allocation3 + $0x50] sm:$0xff] %vm1545_vm10, %v1518_v7 }
 0x233   : > { %1685 = vst.msk [vmem:[#allocation3 + $0x50] sm:$0xff] %vm1674_vm11, %v1647_v56  ;;  %v880_v8 = vpop.permute.xlu1 %879 }
 0x234   : > { %1814 = vst.msk [vmem:[#allocation3 + $0x50] sm:$0xff] %vm1803_vm12, %v1776_v58  ;;  %v1522_v12 = vpop.permute.xlu0 %1521 }
 0x235   : > { %914 = vst.msk [vmem:[#allocation3 + $0x70] sm:$0xff] %vm899_vm4, %v880_v8 }
 0x237   : > { %v1520_v13 = vpop.permute.xlu1 %1519 }
 0x238   : > { %v1651_v48 = vpop.permute.xlu0 %1650  ;;  %1557 = vst.msk [vmem:[#allocation3 + $0x58] sm:$0xff] %vm1545_vm10, %v1520_v13  ;;  %v2361_v13 = vld [vmem:[%s4217_s7] sm:$0x3] }
 0x239   : > { %3108 = vmatprep.subr.msk.bf16.mxu0 %vm437_vm0, %v2361_v13 }
 0x23b   : > { %v1830_v17 = vld [vmem:[#allocation3 + $0x50] sm:$0xff]  ;;  %v1649_v32 = vpop.permute.xlu1 %1648 }
 0x23c   : > { %v1780_v18 = vpop.permute.xlu0 %1779  ;;  %2929 = vmatprep.mubr.msk.bf16.mxu1 %vm1879_vm13, %v1830_v17  ;;  %1686 = vst.msk [vmem:[#allocation3 + $0x58] sm:$0xff] %vm1674_vm11, %v1649_v32 }
 0x23f   : > { %v878_v20 = vpop.permute.xlu1 %877 }
 0x240   : > { %v1009_v47 = vpop.permute.xlu0 %1008  ;;  %913 = vst.msk [vmem:[#allocation3 + $0x68] sm:$0xff] %vm899_vm4, %v878_v20 }
 0x241   : > { %1043 = vst.msk [vmem:[#allocation3 + $0x70] sm:$0xff] %vm1028_vm5, %v1009_v47 }
 0x243   : > { %v1007_v23 = vpop.permute.xlu1 %1006 }
 0x244   : > { %v1778_v19 = vpop.permute.xlu0 %1777  ;;  %1042 = vst.msk [vmem:[#allocation3 + $0x68] sm:$0xff] %vm1028_vm5, %v1007_v23 }
 0x245   : > { %1815 = vst.msk [vmem:[#allocation3 + $0x58] sm:$0xff] %vm1803_vm12, %v1778_v19 }
 0x246   : > { %1171 = vst.msk [vmem:[#allocation3 + $0x68] sm:$0xff] %vm1157_vm7, %v1136_v63 }
 0x247   : > { %1300 = vst.msk [vmem:[#allocation3 + $0x68] sm:$0xff] %vm1286_vm8, %v1265_v2  ;;  %v1140_v25 = vpop.permute.xlu1 %1139 }
 0x248   : > { %1429 = vst.msk [vmem:[#allocation3 + $0x68] sm:$0xff] %vm1415_vm9, %v1394_v62  ;;  %v1134_v26 = vpop.permute.xlu0 %1133 }
 0x249   : > { %1170 = vst.msk [vmem:[#allocation3 + $0x60] sm:$0xff] %vm1157_vm7, %v1134_v26 }
 0x24b   : > { %v1269_v29 = vpop.permute.xlu1 %1268 }
 0x24c   : > { %v1263_v6 = vpop.permute.xlu0 %1262  ;;  %v1831_v51 = vld [vmem:[#allocation3 + $0x58] sm:$0xff] }
 0x24d   : > { %1299 = vst.msk [vmem:[#allocation3 + $0x60] sm:$0xff] %vm1286_vm8, %v1263_v6  ;;  %2930 = vmatmul.mubr.msk.bf16.gmra.mrb[52].mxu1 %vm1879_vm13, %v1831_v51 }
 0x24f   : > { %v1398_v31 = vpop.permute.xlu1 %1397 }
 0x250   : > { %v1392_v24 = vpop.permute.xlu0 %1391 }
 0x251   : > { %1428 = vst.msk [vmem:[#allocation3 + $0x60] sm:$0xff] %vm1415_vm9, %v1392_v24 }
 0x252   : > { %1558 = vst.msk [vmem:[#allocation3 + $0x60] sm:$0xff] %vm1545_vm10, %v1522_v12 }
 0x253   : > { %1687 = vst.msk [vmem:[#allocation3 + $0x60] sm:$0xff] %vm1674_vm11, %v1651_v48  ;;  %v1524_v35 = vpop.permute.xlu1 %1523  ;;  %v2370_v48 = vsel %vm437_vm0, %v2361_v13, 0 }
 0x254   : > { %1816 = vst.msk [vmem:[#allocation3 + $0x60] sm:$0xff] %vm1803_vm12, %v1780_v18  ;;  %v1526_v36 = vpop.permute.xlu0 %1525 }
 0x255   : > { %1559 = vst.msk [vmem:[#allocation3 + $0x68] sm:$0xff] %vm1545_vm10, %v1524_v35 }
 0x257   : > { %v1653_v37 = vpop.permute.xlu1 %1652 }
 0x258   : > { %v1655_v60 = vpop.permute.xlu0 %1654  ;;  %1688 = vst.msk [vmem:[#allocation3 + $0x68] sm:$0xff] %vm1674_vm11, %v1653_v37 }
 0x25b   : > { %v1832_v38 = vld [vmem:[#allocation3 + $0x60] sm:$0xff]  ;;  %v882_v49 = vpop.permute.xlu1 %881 }
 0x25c   : > { %v1782_v11 = vpop.permute.xlu0 %1781  ;;  %2933 = vmatprep.mubr.msk.bf16.mxu1 %vm1879_vm13, %v1832_v38  ;;  %915 = vst.msk [vmem:[#allocation3 + $0x78] sm:$0xff] %vm899_vm4, %v882_v49 }
 0x25d   : > { %1817 = vst.msk [vmem:[#allocation3 + $0x68] sm:$0xff] %vm1803_vm12, %v1782_v11 }
 0x25f   : > { %v1011_v41 = vpop.permute.xlu1 %1010 }
 0x260   : > { %v1138_v52 = vpop.permute.xlu0 %1137  ;;  %1044 = vst.msk [vmem:[#allocation3 + $0x78] sm:$0xff] %vm1028_vm5, %v1011_v41 }
 0x261   : > { %1172 = vst.msk [vmem:[#allocation3 + $0x70] sm:$0xff] %vm1157_vm7, %v1138_v52  ;;  %1173 = vst.msk [vmem:[#allocation3 + $0x78] sm:$0xff] %vm1157_vm7, %v1140_v25 }
 0x262   : > { %1302 = vst.msk [vmem:[#allocation3 + $0x78] sm:$0xff] %vm1286_vm8, %v1269_v29 }
 0x263   : > { %1431 = vst.msk [vmem:[#allocation3 + $0x78] sm:$0xff] %vm1415_vm9, %v1398_v31  ;;  %v1657_v55 = vpop.permute.xlu1 %1656 }
 0x264   : > { %v1267_v53 = vpop.permute.xlu0 %1266  ;;  %v1833_v54 = vld [vmem:[#allocation3 + $0x68] sm:$0xff]  ;;  %1561 = vst.msk [vmem:[#allocation3 + $0x78] sm:$0xff] %vm1545_vm10, %v3720_v30 }
 0x265   : > { %1301 = vst.msk [vmem:[#allocation3 + $0x70] sm:$0xff] %vm1286_vm8, %v1267_v53  ;;  %2934 = vmatmul.mubr.msk.bf16.gmra.mrb[56].mxu1 %vm1879_vm13, %v1833_v54 }
 0x266   : > { %1690 = vst.msk [vmem:[#allocation3 + $0x78] sm:$0xff] %vm1674_vm11, %v1657_v55 }
 0x267   : > { %v1786_v14 = vpop.permute.xlu1 %1785 }
 0x268   : > { %v1396_v7 = vpop.permute.xlu0 %1395  ;;  %1819 = vst.msk [vmem:[#allocation3 + $0x78] sm:$0xff] %vm1803_vm12, %v1786_v14 }
 0x269   : > { %1430 = vst.msk [vmem:[#allocation3 + $0x70] sm:$0xff] %vm1415_vm9, %v1396_v7 }
 0x26a   : > { %1560 = vst.msk [vmem:[#allocation3 + $0x70] sm:$0xff] %vm1545_vm10, %v1526_v36 }
 0x26b   : > { %1689 = vst.msk [vmem:[#allocation3 + $0x70] sm:$0xff] %vm1674_vm11, %v1655_v60 }
 0x26c   : > { %v1784_v56 = vpop.permute.xlu0 %1783 }
 0x26d   : > { %1818 = vst.msk [vmem:[#allocation3 + $0x70] sm:$0xff] %vm1803_vm12, %v1784_v56 }
 0x26f   : > { %v1835_v30 = vld [vmem:[#allocation3 + $0x78] sm:$0xff] }
 0x274   : > { %v1834_v42 = vld [vmem:[#allocation3 + $0x70] sm:$0xff] }
 0x275   : > { %2937 = vmatprep.mubr.msk.bf16.mxu1 %vm1879_vm13, %v1834_v42 }
 0x276   : > { %2938 = vmatmul.mubr.msk.bf16.gmra.mrb[60].mxu1 %vm1879_vm13, %v1835_v30 }
 0x280   : > { %v2911_v58 = vpop.f32.mrb[32].mxu1 }
 0x281   : > { %v1975_v45 = vadd.f32 %v2911_v58, %v3963_v57  ;;  %v1966_v44 = vpop.f32.mrb[33].mxu1 }
 0x282   : > { %v1967_v59 = vadd.f32 %v3963_v57, %v1966_v44  ;;  %v2912_v61 = vpop.f32.mrb[34].mxu1 }
 0x283   : > { %v1978_v63 = vadd.f32 %v2912_v61, %v3963_v57  ;;  %v1969_v1 = vpop.f32.mrb[35].mxu1  ;;  %v2095_v3 = vmax.f32 %v1975_v45, 0.0 }
 0x284   : > { %v1970_v2 = vadd.f32 %v3963_v57, %v1969_v1  ;;  %v2093_v62 = vmax.f32 %v1967_v59, 0.0 }
 0x285   : > { %v2096_v4 = vmax.f32 %v1978_v63, 0.0 }
 0x286   : > { %v2094_v0 = vmax.f32 %v1970_v2, 0.0 }
 0x287   : > { %v2126_v8 = vpack.c.bf16 %v2096_v4, %v2095_v3 }
 0x288   : > { %v2125_v12 = vpack.c.bf16 %v2094_v0, %v2093_v62 }
 0x28a   : > { %2943 = vmatprep.mubr.msk.bf16.mxu0 %vm634_vm2, %v2125_v12 }
 0x28b   : > { %2944 = vmatmul.mubr.msk.bf16.vlgmr.msra.gmra.mrb[0].mxu0 %vm634_vm2, %v2126_v8 }
 0x28c   : > { %2976 = vmatpush3.bf16.msra.mxu0 %v2370_v48 }
 0x2a0   : > { %v2915_v17 = vpop.f32.mrb[36].mxu1 }
 0x2a1   : > { %v1991_v32 = vadd.f32 %v2915_v17, %v3963_v57  ;;  %v1982_v18 = vpop.f32.mrb[37].mxu1 }
 0x2a2   : > { %v1983_v20 = vadd.f32 %v3963_v57, %v1982_v18  ;;  %v2916_v47 = vpop.f32.mrb[38].mxu1 }
 0x2a3   : > { %v1994_v23 = vadd.f32 %v2916_v47, %v3963_v57  ;;  %v1985_v19 = vpop.f32.mrb[39].mxu1  ;;  %v2099_v26 = vmax.f32 %v1991_v32, 0.0 }
 0x2a4   : > { %v1986_v25 = vadd.f32 %v3963_v57, %v1985_v19  ;;  %v2097_v6 = vmax.f32 %v1983_v20, 0.0 }
 0x2a5   : > { %v2100_v29 = vmax.f32 %v1994_v23, 0.0 }
 0x2a6   : > { %v2098_v51 = vmax.f32 %v1986_v25, 0.0 }
 0x2a7   : > { %v2128_v31 = vpack.c.bf16 %v2100_v29, %v2099_v26 }
 0x2a8   : > { %v2127_v24 = vpack.c.bf16 %v2098_v51, %v2097_v6 }
 0x2aa   : > { %2947 = vmatprep.mubr.msk.bf16.mxu0 %vm634_vm2, %v2127_v24 }
 0x2ab   : > { %2948 = vmatmul.mubr.msk.bf16.gmra.mrb[4].mxu0 %vm634_vm2, %v2128_v31 }
 0x2c0   : > { %v2919_v35 = vpop.f32.mrb[40].mxu1 }
 0x2c1   : > { %v2007_v36 = vadd.f32 %v2919_v35, %v3963_v57  ;;  %v1998_v37 = vpop.f32.mrb[41].mxu1 }
 0x2c2   : > { %v1999_v60 = vadd.f32 %v3963_v57, %v1998_v37  ;;  %v2920_v38 = vpop.f32.mrb[42].mxu1 }
 0x2c3   : > { %v2010_v49 = vadd.f32 %v2920_v38, %v3963_v57  ;;  %v2001_v11 = vpop.f32.mrb[43].mxu1  ;;  %v2103_v52 = vmax.f32 %v2007_v36, 0.0 }
 0x2c4   : > { %v2002_v41 = vadd.f32 %v3963_v57, %v2001_v11  ;;  %v2101_v54 = vmax.f32 %v1999_v60, 0.0 }
 0x2c5   : > { %v2104_v53 = vmax.f32 %v2010_v49, 0.0 }
 0x2c6   : > { %v2102_v55 = vmax.f32 %v2002_v41, 0.0 }
 0x2c7   : > { %v2130_v7 = vpack.c.bf16 %v2104_v53, %v2103_v52 }
 0x2c8   : > { %v2129_v14 = vpack.c.bf16 %v2102_v55, %v2101_v54 }
 0x2ca   : > { %2951 = vmatprep.mubr.msk.bf16.mxu0 %vm634_vm2, %v2129_v14 }
 0x2cb   : > { %2952 = vmatmul.mubr.msk.bf16.gmra.mrb[8].mxu0 %vm634_vm2, %v2130_v7 }
 0x2e0   : > { %v2923_v56 = vpop.f32.mrb[44].mxu1 }
 0x2e1   : > { %v2023_v30 = vadd.f32 %v2923_v56, %v3963_v57  ;;  %v2014_v42 = vpop.f32.mrb[45].mxu1 }
 0x2e2   : > { %v2015_v58 = vadd.f32 %v3963_v57, %v2014_v42  ;;  %v2924_v45 = vpop.f32.mrb[46].mxu1 }
 0x2e3   : > { %v2026_v44 = vadd.f32 %v2924_v45, %v3963_v57  ;;  %v2017_v59 = vpop.f32.mrb[47].mxu1  ;;  %v2107_v63 = vmax.f32 %v2023_v30, 0.0 }
 0x2e4   : > { %v2018_v61 = vadd.f32 %v3963_v57, %v2017_v59  ;;  %v2105_v2 = vmax.f32 %v2015_v58, 0.0 }
 0x2e5   : > { %v2108_v1 = vmax.f32 %v2026_v44, 0.0 }
 0x2e6   : > { %v2106_v3 = vmax.f32 %v2018_v61, 0.0 }
 0x2e7   : > { %v2132_v4 = vpack.c.bf16 %v2108_v1, %v2107_v63 }
 0x2e8   : > { %v2131_v62 = vpack.c.bf16 %v2106_v3, %v2105_v2 }
 0x2ea   : > { %2955 = vmatprep.mubr.msk.bf16.mxu0 %vm634_vm2, %v2131_v62 }
 0x2eb   : > { %2956 = vmatmul.mubr.msk.bf16.gmra.mrb[12].mxu0 %vm634_vm2, %v2132_v4 }
 0x300   : > { %v2927_v0 = vpop.f32.mrb[48].mxu1 }
 0x301   : > { %v2039_v8 = vadd.f32 %v2927_v0, %v3963_v57  ;;  %v2030_v12 = vpop.f32.mrb[49].mxu1 }
 0x302   : > { %v2031_v13 = vadd.f32 %v3963_v57, %v2030_v12  ;;  %v2928_v48 = vpop.f32.mrb[50].mxu1 }
 0x303   : > { %v2042_v17 = vadd.f32 %v2928_v48, %v3963_v57  ;;  %v2033_v32 = vpop.f32.mrb[51].mxu1  ;;  %v2111_v20 = vmax.f32 %v2039_v8, 0.0 }
 0x304   : > { %v2034_v18 = vadd.f32 %v3963_v57, %v2033_v32  ;;  %v2109_v23 = vmax.f32 %v2031_v13, 0.0 }
 0x305   : > { %v2112_v47 = vmax.f32 %v2042_v17, 0.0 }
 0x306   : > { %v2110_v19 = vmax.f32 %v2034_v18, 0.0 }
 0x307   : > { %v2134_v25 = vpack.c.bf16 %v2112_v47, %v2111_v20 }
 0x308   : > { %v2133_v26 = vpack.c.bf16 %v2110_v19, %v2109_v23 }
 0x30a   : > { %2959 = vmatprep.mubr.msk.bf16.mxu0 %vm634_vm2, %v2133_v26 }
 0x30b   : > { %2960 = vmatmul.mubr.msk.bf16.gmra.mrb[16].mxu0 %vm634_vm2, %v2134_v25 }
 0x320   : > { %v2931_v29 = vpop.f32.mrb[52].mxu1 }
 0x321   : > { %v2055_v6 = vadd.f32 %v2931_v29, %v3963_v57  ;;  %v2046_v51 = vpop.f32.mrb[53].mxu1 }
 0x322   : > { %v2047_v31 = vadd.f32 %v3963_v57, %v2046_v51  ;;  %v2932_v24 = vpop.f32.mrb[54].mxu1 }
 0x323   : > { %v2058_v35 = vadd.f32 %v2932_v24, %v3963_v57  ;;  %v2049_v36 = vpop.f32.mrb[55].mxu1  ;;  %v2115_v60 = vmax.f32 %v2055_v6, 0.0 }
 0x324   : > { %v2050_v37 = vadd.f32 %v3963_v57, %v2049_v36  ;;  %v2113_v49 = vmax.f32 %v2047_v31, 0.0 }
 0x325   : > { %v2116_v38 = vmax.f32 %v2058_v35, 0.0 }
 0x326   : > { %v2114_v11 = vmax.f32 %v2050_v37, 0.0 }
 0x327   : > { %v2136_v41 = vpack.c.bf16 %v2116_v38, %v2115_v60 }
 0x328   : > { %v2135_v52 = vpack.c.bf16 %v2114_v11, %v2113_v49 }
 0x32a   : > { %2963 = vmatprep.mubr.msk.bf16.mxu0 %vm634_vm2, %v2135_v52 }
 0x32b   : > { %2964 = vmatmul.mubr.msk.bf16.gmra.mrb[20].mxu0 %vm634_vm2, %v2136_v41 }
 0x338   : > { %v2935_v53 = vpop.f32.mrb[56].mxu1 }
 0x339   : > { %v2071_v54 = vadd.f32 %v2935_v53, %v3963_v57  ;;  %v2062_v55 = vpop.f32.mrb[57].mxu1 }
 0x33a   : > { %v2063_v7 = vadd.f32 %v3963_v57, %v2062_v55  ;;  %v2936_v14 = vpop.f32.mrb[58].mxu1 }
 0x33b   : > { %v2074_v56 = vadd.f32 %v2936_v14, %v3963_v57  ;;  %v2065_v30 = vpop.f32.mrb[59].mxu1  ;;  %v2119_v58 = vmax.f32 %v2071_v54, 0.0 }
 0x33c   : > { %v2066_v42 = vadd.f32 %v3963_v57, %v2065_v30  ;;  %v2117_v44 = vmax.f32 %v2063_v7, 0.0 }
 0x33d   : > { %v2120_v45 = vmax.f32 %v2074_v56, 0.0 }
 0x33e   : > { %v2118_v59 = vmax.f32 %v2066_v42, 0.0 }
 0x33f   : > { %v2138_v61 = vpack.c.bf16 %v2120_v45, %v2119_v58 }
 0x340   : > { %v2137_v63 = vpack.c.bf16 %v2118_v59, %v2117_v44 }
 0x342   : > { %2967 = vmatprep.mubr.msk.bf16.mxu0 %vm634_vm2, %v2137_v63 }
 0x343   : > { %2968 = vmatmul.mubr.msk.bf16.gmra.mrb[24].mxu0 %vm634_vm2, %v2138_v61 }
 0x349   : > { %v2939_v1 = vpop.f32.mrb[60].mxu1 }
 0x34a   : > { %v2087_v2 = vadd.f32 %v2939_v1, %v3963_v57  ;;  %v2078_v3 = vpop.f32.mrb[61].mxu1 }
 0x34b   : > { %v2079_v4 = vadd.f32 %v3963_v57, %v2078_v3  ;;  %v2940_v62 = vpop.f32.mrb[62].mxu1 }
 0x34c   : > { %v2090_v0 = vadd.f32 %v2940_v62, %v3963_v57  ;;  %v2081_v8 = vpop.f32.mrb[63].mxu1  ;;  %v2123_v13 = vmax.f32 %v2087_v2, 0.0 }
 0x34d   : > { %v2082_v12 = vadd.f32 %v3963_v57, %v2081_v8  ;;  %v2121_v17 = vmax.f32 %v2079_v4, 0.0 }
 0x34e   : > { %v2124_v48 = vmax.f32 %v2090_v0, 0.0 }
 0x34f   : > { %v2122_v32 = vmax.f32 %v2082_v12, 0.0 }
 0x350   : > { %v2140_v18 = vpack.c.bf16 %v2124_v48, %v2123_v13 }
 0x351   : > { %v2139_v20 = vpack.c.bf16 %v2122_v32, %v2121_v17 }
 0x353   : > { %2971 = vmatprep.mubr.msk.bf16.mxu0 %vm634_vm2, %v2139_v20 }
 0x354   : > { %2972 = vmatmul.mubr.msk.bf16.gmra.mrb[28].mxu0 %vm634_vm2, %v2140_v18 }
 0x355   : > { %2977 = vmatprep.mubr.msk.bf16.mxu0 %vm388_vm1, %v3351_v5  ;;  %v2752_v5 = vld [vmem:[%s4216_s6] ss:$0 sm:$0xff] }
 0x35c   : > { %2978 = vmatmul.mubr.msk.bf16.vlgmr.msra.gmra.mrb[0].mxu0 %vm388_vm1, %v3356_v9  ;;  %v2769_v9 = vld [vmem:[%s4218_s8] ss:$0 sm:$0xff] }
 0x35d   : > { %2981 = vmatprep.mubr.msk.bf16.mxu0 %vm388_vm1, %v3358_v10  ;;  %v4057_v10 = vadd.f32 %v2769_v9, %v2752_v5 }
 0x364   : > { %2982 = vmatmul.mubr.msk.bf16.gmra.mrb[4].mxu0 %vm388_vm1, %v3370_v15 }
 0x365   : > { %2985 = vmatprep.mubr.msk.bf16.mxu0 %vm388_vm1, %v3372_v16 }
 0x36c   : > { %2986 = vmatmul.mubr.msk.bf16.gmra.mrb[8].mxu0 %vm388_vm1, %v3382_v21 }
 0x36d   : > { %2989 = vmatprep.mubr.msk.bf16.mxu0 %vm388_vm1, %v3384_v22 }
 0x374   : > { %2990 = vmatmul.mubr.msk.bf16.gmra.mrb[12].mxu0 %vm388_vm1, %v3394_v27 }
 0x375   : > { %2993 = vmatprep.mubr.msk.bf16.mxu0 %vm388_vm1, %v3396_v28 }
 0x37c   : > { %2994 = vmatmul.mubr.msk.bf16.gmra.mrb[16].mxu0 %vm388_vm1, %v3406_v33 }
 0x37d   : > { %2997 = vmatprep.mubr.msk.bf16.mxu0 %vm388_vm1, %v3408_v34 }
 0x384   : > { %2998 = vmatmul.mubr.msk.bf16.gmra.mrb[20].mxu0 %vm388_vm1, %v3418_v39 }
 0x385   : > { %3001 = vmatprep.mubr.msk.bf16.mxu0 %vm388_vm1, %v3420_v40 }
 0x38c   : > { %3002 = vmatmul.mubr.msk.bf16.gmra.mrb[24].mxu0 %vm388_vm1, %v3428_v43 }
 0x38d   : > { %3005 = vmatprep.mubr.msk.bf16.mxu0 %vm388_vm1, %v3434_v46 }
 0x394   : > { %3006 = vmatmul.mubr.msk.bf16.gmra.mrb[28].mxu0 %vm388_vm1, %v3474_v50 }
 0x42f   : > { %v2979_v15 = vpop.f32.mrb[0].mxu0 }
 0x430   : > { %v3009_v16 = vadd.f32 %v2979_v15, %v2752_v5  ;;  %v2406_v21 = vpop.f32.mrb[1].mxu0 }
 0x431   : > { %v3011_v22 = vadd.f32 %v2752_v5, %v2406_v21  ;;  %v2980_v27 = vpop.f32.mrb[2].mxu0 }
 0x432   : > { %v3010_v28 = vadd.f32 %v3009_v16, %v2769_v9  ;;  %v3014_v33 = vadd.f32 %v4057_v10, %v2980_v27  ;;  %v2409_v34 = vpop.f32.mrb[3].mxu0 }
 0x433   : > { %v3012_v39 = vadd.f32 %v3011_v22, %v2769_v9  ;;  %v3016_v40 = vadd.f32 %v4057_v10, %v2409_v34 }
 0x434   : > { %v2567_v43 = vmax.f32 %v3010_v28, 0.0  ;;  %v2568_v46 = vmax.f32 %v3014_v33, 0.0 }
 0x435   : > { %v2565_v50 = vmax.f32 %v3012_v39, 0.0  ;;  %v2566_v57 = vmax.f32 %v3016_v40, 0.0 }
 0x436   : > { %2600 = vst.msk [vmem:[%s4063_s14 + $0x10] sm:$0xff] %vm2597_vm14, %v2567_v43  ;;  %2601 = vst.msk [vmem:[%s4063_s14 + $0x18] sm:$0xff] %vm2597_vm14, %v2568_v46 }
 0x437   : > { %2598 = vst.msk [vmem:[%s4063_s14] sm:$0xff] %vm2597_vm14, %v2565_v50  ;;  %2599 = vst.msk [vmem:[%s4063_s14 + $0x8] sm:$0xff] %vm2597_vm14, %v2566_v57  ;;  %v2983_v47 = vpop.f32.mrb[4].mxu0 }
 0x438   : > { %v3018_v23 = vadd.f32 %v4057_v10, %v2983_v47  ;;  %v2422_v19 = vpop.f32.mrb[5].mxu0 }
 0x439   : > { %v3020_v25 = vadd.f32 %v4057_v10, %v2422_v19  ;;  %v2984_v26 = vpop.f32.mrb[6].mxu0 }
 0x43a   : > { %v2571_v29 = vmax.f32 %v3018_v23, 0.0  ;;  %v3022_v6 = vadd.f32 %v4057_v10, %v2984_v26  ;;  %v2425_v51 = vpop.f32.mrb[7].mxu0 }
 0x43b   : > { %v2569_v31 = vmax.f32 %v3020_v25, 0.0  ;;  %v3024_v24 = vadd.f32 %v4057_v10, %v2425_v51 }
 0x43c   : > { %2604 = vst.msk [vmem:[%s4063_s14 + $0x30] sm:$0xff] %vm2597_vm14, %v2571_v29  ;;  %v2572_v35 = vmax.f32 %v3022_v6, 0.0 }
 0x43d   : > { %2602 = vst.msk [vmem:[%s4063_s14 + $0x20] sm:$0xff] %vm2597_vm14, %v2569_v31  ;;  %v2570_v36 = vmax.f32 %v3024_v24, 0.0 }
 0x43e   : > { %2605 = vst.msk [vmem:[%s4063_s14 + $0x38] sm:$0xff] %vm2597_vm14, %v2572_v35 }
 0x43f   : > { %2603 = vst.msk [vmem:[%s4063_s14 + $0x28] sm:$0xff] %vm2597_vm14, %v2570_v36  ;;  %v2987_v37 = vpop.f32.mrb[8].mxu0 }
 0x440   : > { %v3026_v60 = vadd.f32 %v4057_v10, %v2987_v37  ;;  %v2438_v38 = vpop.f32.mrb[9].mxu0 }
 0x441   : > { %v3028_v49 = vadd.f32 %v4057_v10, %v2438_v38  ;;  %v2988_v11 = vpop.f32.mrb[10].mxu0 }
 0x442   : > { %v2575_v41 = vmax.f32 %v3026_v60, 0.0  ;;  %v3030_v52 = vadd.f32 %v4057_v10, %v2988_v11  ;;  %v2441_v53 = vpop.f32.mrb[11].mxu0 }
 0x443   : > { %v2573_v54 = vmax.f32 %v3028_v49, 0.0  ;;  %v3032_v55 = vadd.f32 %v4057_v10, %v2441_v53 }
 0x444   : > { %2608 = vst.msk [vmem:[%s4063_s14 + $0x50] sm:$0xff] %vm2597_vm14, %v2575_v41  ;;  %v2576_v7 = vmax.f32 %v3030_v52, 0.0 }
 0x445   : > { %2606 = vst.msk [vmem:[%s4063_s14 + $0x40] sm:$0xff] %vm2597_vm14, %v2573_v54  ;;  %v2574_v14 = vmax.f32 %v3032_v55, 0.0 }
 0x446   : > { %2609 = vst.msk [vmem:[%s4063_s14 + $0x58] sm:$0xff] %vm2597_vm14, %v2576_v7 }
 0x447   : > { %2607 = vst.msk [vmem:[%s4063_s14 + $0x48] sm:$0xff] %vm2597_vm14, %v2574_v14  ;;  %v2991_v56 = vpop.f32.mrb[12].mxu0 }
 0x448   : > { %v3034_v30 = vadd.f32 %v4057_v10, %v2991_v56  ;;  %v2454_v42 = vpop.f32.mrb[13].mxu0 }
 0x449   : > { %v3036_v58 = vadd.f32 %v4057_v10, %v2454_v42  ;;  %v2992_v45 = vpop.f32.mrb[14].mxu0 }
 0x44a   : > { %v2579_v44 = vmax.f32 %v3034_v30, 0.0  ;;  %v3038_v59 = vadd.f32 %v4057_v10, %v2992_v45  ;;  %v2457_v61 = vpop.f32.mrb[15].mxu0 }
 0x44b   : > { %v2577_v63 = vmax.f32 %v3036_v58, 0.0  ;;  %v3040_v1 = vadd.f32 %v4057_v10, %v2457_v61 }
 0x44c   : > { %2612 = vst.msk [vmem:[%s4063_s14 + $0x70] sm:$0xff] %vm2597_vm14, %v2579_v44  ;;  %v2580_v2 = vmax.f32 %v3038_v59, 0.0 }
 0x44d   : > { %2610 = vst.msk [vmem:[%s4063_s14 + $0x60] sm:$0xff] %vm2597_vm14, %v2577_v63  ;;  %v2578_v3 = vmax.f32 %v3040_v1, 0.0 }
 0x44e   : > { %2613 = vst.msk [vmem:[%s4063_s14 + $0x78] sm:$0xff] %vm2597_vm14, %v2580_v2 }
 0x44f   : > { %2611 = vst.msk [vmem:[%s4063_s14 + $0x68] sm:$0xff] %vm2597_vm14, %v2578_v3  ;;  %v2995_v4 = vpop.f32.mrb[16].mxu0 }
 0x450   : > { %v3042_v62 = vadd.f32 %v4057_v10, %v2995_v4  ;;  %v2470_v0 = vpop.f32.mrb[17].mxu0 }
 0x451   : > { %v3044_v8 = vadd.f32 %v4057_v10, %v2470_v0  ;;  %v2996_v12 = vpop.f32.mrb[18].mxu0 }
 0x452   : > { %v2583_v13 = vmax.f32 %v3042_v62, 0.0  ;;  %v3046_v48 = vadd.f32 %v4057_v10, %v2996_v12  ;;  %v2473_v17 = vpop.f32.mrb[19].mxu0 }
 0x453   : > { %v2581_v32 = vmax.f32 %v3044_v8, 0.0  ;;  %v3048_v18 = vadd.f32 %v4057_v10, %v2473_v17 }
 0x454   : > { %2616 = vst.msk [vmem:[%s4063_s14 + $0x90] sm:$0xff] %vm2597_vm14, %v2583_v13  ;;  %v2584_v20 = vmax.f32 %v3046_v48, 0.0 }
 0x455   : > { %2614 = vst.msk [vmem:[%s4063_s14 + $0x80] sm:$0xff] %vm2597_vm14, %v2581_v32  ;;  %v2582_v5 = vmax.f32 %v3048_v18, 0.0 }
 0x456   : > { %2617 = vst.msk [vmem:[%s4063_s14 + $0x98] sm:$0xff] %vm2597_vm14, %v2584_v20 }
 0x457   : > { %2615 = vst.msk [vmem:[%s4063_s14 + $0x88] sm:$0xff] %vm2597_vm14, %v2582_v5  ;;  %v2999_v9 = vpop.f32.mrb[20].mxu0 }
 0x458   : > { %v3050_v15 = vadd.f32 %v4057_v10, %v2999_v9  ;;  %v2486_v16 = vpop.f32.mrb[21].mxu0 }
 0x459   : > { %v3052_v21 = vadd.f32 %v4057_v10, %v2486_v16  ;;  %v3000_v22 = vpop.f32.mrb[22].mxu0 }
 0x45a   : > { %v2587_v27 = vmax.f32 %v3050_v15, 0.0  ;;  %v3054_v28 = vadd.f32 %v4057_v10, %v3000_v22  ;;  %v2489_v33 = vpop.f32.mrb[23].mxu0 }
 0x45b   : > { %v2585_v34 = vmax.f32 %v3052_v21, 0.0  ;;  %v3056_v39 = vadd.f32 %v4057_v10, %v2489_v33 }
 0x45c   : > { %2620 = vst.msk [vmem:[%s4063_s14 + $0xb0] sm:$0xff] %vm2597_vm14, %v2587_v27  ;;  %v2588_v40 = vmax.f32 %v3054_v28, 0.0 }
 0x45d   : > { %2618 = vst.msk [vmem:[%s4063_s14 + $0xa0] sm:$0xff] %vm2597_vm14, %v2585_v34  ;;  %v2586_v43 = vmax.f32 %v3056_v39, 0.0 }
 0x45e   : > { %2621 = vst.msk [vmem:[%s4063_s14 + $0xb8] sm:$0xff] %vm2597_vm14, %v2588_v40 }
 0x45f   : > { %2619 = vst.msk [vmem:[%s4063_s14 + $0xa8] sm:$0xff] %vm2597_vm14, %v2586_v43  ;;  %v3003_v46 = vpop.f32.mrb[24].mxu0 }
 0x460   : > { %v3058_v50 = vadd.f32 %v4057_v10, %v3003_v46  ;;  %v2502_v57 = vpop.f32.mrb[25].mxu0 }
 0x461   : > { %v3060_v47 = vadd.f32 %v4057_v10, %v2502_v57  ;;  %v3004_v23 = vpop.f32.mrb[26].mxu0 }
 0x462   : > { %v2591_v19 = vmax.f32 %v3058_v50, 0.0  ;;  %v3062_v25 = vadd.f32 %v4057_v10, %v3004_v23  ;;  %v2505_v26 = vpop.f32.mrb[27].mxu0 }
 0x463   : > { %v2589_v29 = vmax.f32 %v3060_v47, 0.0  ;;  %v3064_v6 = vadd.f32 %v4057_v10, %v2505_v26 }
 0x464   : > { %2624 = vst.msk [vmem:[%s4063_s14 + $0xd0] sm:$0xff] %vm2597_vm14, %v2591_v19  ;;  %v2592_v51 = vmax.f32 %v3062_v25, 0.0 }
 0x465   : > { %2622 = vst.msk [vmem:[%s4063_s14 + $0xc0] sm:$0xff] %vm2597_vm14, %v2589_v29  ;;  %v2590_v31 = vmax.f32 %v3064_v6, 0.0 }
 0x466   : > { %2625 = vst.msk [vmem:[%s4063_s14 + $0xd8] sm:$0xff] %vm2597_vm14, %v2592_v51 }
 0x467   : > { %2623 = vst.msk [vmem:[%s4063_s14 + $0xc8] sm:$0xff] %vm2597_vm14, %v2590_v31  ;;  %v3007_v24 = vpop.f32.mrb[28].mxu0 }
 0x468   : > { %v3066_v35 = vadd.f32 %v4057_v10, %v3007_v24  ;;  %v2518_v36 = vpop.f32.mrb[29].mxu0 }
 0x469   : > { %v3068_v37 = vadd.f32 %v4057_v10, %v2518_v36  ;;  %v3008_v60 = vpop.f32.mrb[30].mxu0 }
 0x46a   : > { %v2595_v38 = vmax.f32 %v3066_v35, 0.0  ;;  %v3070_v49 = vadd.f32 %v4057_v10, %v3008_v60  ;;  %v2521_v11 = vpop.f32.mrb[31].mxu0 }
 0x46b   : > { %v2593_v41 = vmax.f32 %v3068_v37, 0.0  ;;  %v3072_v52 = vadd.f32 %v4057_v10, %v2521_v11 }
 0x46c   : > { %2628 = vst.msk [vmem:[%s4063_s14 + $0xf0] sm:$0xff] %vm2597_vm14, %v2595_v38  ;;  %v2596_v53 = vmax.f32 %v3070_v49, 0.0 }
 0x46d   : > { %2626 = vst.msk [vmem:[%s4063_s14 + $0xe0] sm:$0xff] %vm2597_vm14, %v2593_v41  ;;  %v2594_v54 = vmax.f32 %v3072_v52, 0.0 }
 0x46e   : > { %2629 = vst.msk [vmem:[%s4063_s14 + $0xf8] sm:$0xff] %vm2597_vm14, %v2596_v53 }
 0x46f   : > { %2627 = vst.msk [vmem:[%s4063_s14 + $0xe8] sm:$0xff] %vm2597_vm14, %v2594_v54 }
 0x470   : > { %3176 = shalt.err (!%p3173_p3)
}
 0x471   : > { %s3177_s27 = scalar_lea.hbm %s4156_s25, 4096  ;;  %s3181_s23 = scalar_lea.hbm %s4219_s9, 8192 }
 0x472   : > { %p3178_p4 = scmp.ne.s32.totalorder %s4156_s25, %s3177_s27  ;;  %p3182_p9 = scmp.lt.u32.totalorder %s4156_s25, %s4219_s9 }
 0x473   : > { %p3183_p10 = scmp.lt.u32.totalorder %s3181_s23, %s3177_s27  ;;  %p3185_p12 = scmp.lt.u32.totalorder %s3177_s27, %s4156_s25 }
 0x474   : > { %p3179_p7 = pnand %p3178_p4, %p3326_p5 }
 0x475   : > { %p3184_p11 = por %p3183_p10, %p3182_p9 }
 0x476   : > { %p3180_p8 = pneg %p3179_p7 }
 0x477   : > { %p3186_p13 = por %p3185_p12, %p3184_p11 }
 0x479   : > { %p3187_p0 = pnand %p3186_p13, %p3180_p8 }
 0x47b   : > { %3190 = shalt.err (!%p3187_p0)
}
 0x47c   : > { %s3237_s16 = smov 128  }
 0x47d   : > { %3109 = dma.vmem_to_hbm [thread:$0]  (%p3326_p5), %s4160_s22, 4096, %s4156_s25, %s4168_s13, %s3237_s16, %s3237_s16, %s3229_s29  }
 0x47e PF: > { %p3115_p1 = scmp.ge.s32.totalorder %s3225_s12, 2  ;;  %s2659_s26 = sand.u32 1, %s3213_s30  }
 0x47f   : > { %s2660_s28 = scalar_lea.sflag [#allocation5], %s2659_s26 }
 0x480   : > { %p3112_p2 = pnand %p3115_p1, %p3330_p6 }
 0x482   : > { %3208 = dma.done.wait (!%p3112_p2), %s2660_s28, 4096  }
 0x483   : > { %3210 = vsyncadd (!%p3112_p2), %s2660_s28, 4294963200  ;;  %p19_p3 = scmp.ge.s32.totalorder %s3313_s15, 4   ;;  %s4222_s30 = smov %s3217_s10 }
 0x484   : > { %s4223_s10 = smov %s3221_s11  ;;  %s4224_s11 = smov %s3324_s18 }
 0x485   : > { %s4225_s12 = smov %s3313_s15  ;;  %21 = sbr.rel (!%p19_p3) target bundleno = 3 (0x3), region = 93 }
 0x48c   :  { %2665 = vsyncpa [#allocation5], 1 }
 0x48d   :  { %2667 = vsyncpa [#allocation5 + $0x1], 1 }

</bundles_post_ra>
